<compile_context>
chip_gen: v7x
topology: tpu7x:2x2x1
jax: 0.10.0
libtpu: 0.0.40
codegen_flags: <defaults>
</compile_context>

<pallas_src>
import functools

import jax
import jax.numpy as jnp
from jax.experimental import pallas as pl
from jax.experimental.pallas import tpu as pltpu


_SUBLANE = 8
_LANE = 128
_VMEM_LIMIT_BYTES = 48 * 1024 * 1024          # safe on v7x (64 MiB) and v5e/v6e
_TEMP_BYTES_BUDGET = 16 * 1024 * 1024         # (tn, lanes) f32 temporaries (~3 live)
_RESIDENT_CODEBOOK_BYTES = 8 * 1024 * 1024    # codebook-resident fast-path cutoff


def _round_up(x, m):
    return (x + m - 1) // m * m


def _first_argmin_lanes(d):
    """First-occurrence argmin along the lane axis of a (rows, lanes) f32 tile."""
    lanes = d.shape[1]
    d_min = jnp.min(d, axis=1, keepdims=True)                       # (rows, 1)
    lane = jax.lax.broadcasted_iota(jnp.int32, (1, lanes), 1)       # (1, lanes)
    idx = jnp.min(jnp.where(d == d_min, lane, jnp.int32(lanes)),
                  axis=1, keepdims=True)                            # (rows, 1)
    return d_min, idx


def _vq_resident_kernel(z_ref, e_ref, esq_ref, idx_ref, *, compute_dtype):
    """Whole codebook resident in VMEM; 1-D grid over row tiles."""
    z = z_ref[...].astype(compute_dtype)                            # (tn, D)
    e = e_ref[...].astype(compute_dtype)                            # (ne_pad, D)
    ze = jax.lax.dot_general(z, e, (((1,), (1,)), ((), ())),
                             preferred_element_type=jnp.float32)    # (tn, ne_pad)
    d = esq_ref[...] - 2.0 * ze                                     # ||z||^2 dropped
    _, idx = _first_argmin_lanes(d)
    idx_ref[...] = idx


def _vq_tiled_kernel(z_ref, e_ref, esq_ref, idx_ref, min_ref, *, compute_dtype):
    """Fallback for very large codebooks: running min across codebook tiles."""
    j = pl.program_id(1)
    te = e_ref.shape[0]

    @pl.when(j == 0)
    def _():
        min_ref[...] = jnp.full(min_ref.shape, jnp.inf, jnp.float32)
        idx_ref[...] = jnp.zeros_like(idx_ref)

    z = z_ref[...].astype(compute_dtype)
    e = e_ref[...].astype(compute_dtype)
    ze = jax.lax.dot_general(z, e, (((1,), (1,)), ((), ())),
                             preferred_element_type=jnp.float32)
    d = esq_ref[...] - 2.0 * ze
    d_min, local = _first_argmin_lanes(d)
    # strict '<' keeps the earliest codebook tile on exact ties, matching
    # torch.argmin first-occurrence semantics (j runs in increasing order).
    update = d_min < min_ref[...]
    min_ref[...] = jnp.where(update, d_min, min_ref[...])
    idx_ref[...] = jnp.where(update, local + j * te, idx_ref[...])


def _pick_tn(n, lanes, tile_n_cap):
    """Row-tile size: bounded by the f32 temporaries budget and >=2 tiles."""
    by_temp = _TEMP_BYTES_BUDGET // (3 * 4 * max(lanes, 1))
    by_temp = max(_SUBLANE, (by_temp // _SUBLANE) * _SUBLANE)
    tn = min(int(tile_n_cap), by_temp)
    # give the "parallel" row axis at least 2 tiles so both v7x TCs get work
    two_way = _round_up(max(pl.cdiv(n, 2), 1), _SUBLANE)
    tn = max(_SUBLANE, min(tn, two_way))
    return tn


def vq_nearest_indices(z_flat, embedding, *, tile_n=1024, tile_e=2048,
                       compute_dtype=jnp.bfloat16):
    """Nearest-codebook indices for each row of z_flat (N, D) -> int32 (N,).

    This is also the `is_pre_cal` eval return of the reference module.
    """
    n, d_model = z_flat.shape
    n_e, d_emb = embedding.shape
    assert d_emb == d_model

    # Codebook (small) is cast/padded once in the wrapper; padded entries get
    # +inf squared norm (and zero rows => zero dot product) so they never win.
    e_sq = jnp.sum(embedding.astype(jnp.float32) ** 2, axis=1)
    resident = n_e * d_model * jnp.dtype(compute_dtype).itemsize <= _RESIDENT_CODEBOOK_BYTES

    if resident:
        ne_pad = _round_up(n_e, _LANE)
    else:
        te = max(_LANE, _round_up(min(int(tile_e), n_e), _LANE))
        ne_pad = _round_up(n_e, te)

    e_cb = embedding.astype(compute_dtype)
    if ne_pad != n_e:
        e_cb = jnp.pad(e_cb, ((0, ne_pad - n_e), (0, 0)))
        e_sq = jnp.pad(e_sq, (0, ne_pad - n_e), constant_values=jnp.inf)
    e_sq = e_sq.reshape(1, ne_pad)

    compiler = dict(vmem_limit_bytes=_VMEM_LIMIT_BYTES)

    if resident:
        tn = _pick_tn(n, ne_pad, tile_n)
        grid = (pl.cdiv(n, tn),)
        idx = pl.pallas_call(
            functools.partial(_vq_resident_kernel, compute_dtype=compute_dtype),
            out_shape=jax.ShapeDtypeStruct((n, 1), jnp.int32),
            grid_spec=pltpu.PrefetchScalarGridSpec(
                num_scalar_prefetch=0,
                grid=grid,
                in_specs=[
                    pl.BlockSpec((tn, d_model), lambda i: (i, 0)),       # z tile
                    pl.BlockSpec((ne_pad, d_model), lambda i: (0, 0)),   # codebook (resident)
                    pl.BlockSpec((1, ne_pad), lambda i: (0, 0)),         # ||e||^2
                ],
                out_specs=pl.BlockSpec((tn, 1), lambda i: (i, 0)),
            ),
            compiler_params=pltpu.CompilerParams(
                dimension_semantics=("parallel",), **compiler),
        )(z_flat, e_cb, e_sq)
    else:
        tn = _pick_tn(n, te, tile_n)
        grid = (pl.cdiv(n, tn), ne_pad // te)
        idx = pl.pallas_call(
            functools.partial(_vq_tiled_kernel, compute_dtype=compute_dtype),
            out_shape=jax.ShapeDtypeStruct((n, 1), jnp.int32),
            grid_spec=pltpu.PrefetchScalarGridSpec(
                num_scalar_prefetch=0,
                grid=grid,
                in_specs=[
                    pl.BlockSpec((tn, d_model), lambda i, j: (i, 0)),    # z tile
                    pl.BlockSpec((te, d_model), lambda i, j: (j, 0)),    # codebook tile
                    pl.BlockSpec((1, te), lambda i, j: (0, j)),          # ||e||^2 tile
                ],
                out_specs=pl.BlockSpec((tn, 1), lambda i, j: (i, 0)),
                scratch_shapes=[pltpu.VMEM((tn, 1), jnp.float32)],
            ),
            compiler_params=pltpu.CompilerParams(
                dimension_semantics=("parallel", "arbitrary"), **compiler),
        )(z_flat, e_cb, e_sq)

    return idx.reshape(n)


def vector_quantizer_nolinear_forward(z, embedding, *, tile_n=1024, tile_e=2048,
                                      compute_dtype=jnp.bfloat16):
    """Eval-mode forward of VectorQuantizer_noLinear.  Returns (z_q, loss=0)."""
    orig_shape = z.shape
    d_model = orig_shape[-1]
    z_flat = z.reshape(-1, d_model)

    idx = vq_nearest_indices(z_flat, embedding, tile_n=tile_n, tile_e=tile_e,
                             compute_dtype=compute_dtype)
    z_q = jnp.take(embedding, idx, axis=0).reshape(orig_shape)

    # TODO(synk): training branch (rotation-trick straight-through + commitment
    # loss 2*mean((z_q - z)^2)), torch.unique "activated vectors" logging and
    # the RNG-gated prints are not emitted here; the is_pre_cal path is exposed
    # as vq_nearest_indices().
    return z_q, jnp.zeros((), jnp.float32)


if __name__ == "__main__":
    key = jax.random.PRNGKey(0)
    k_emb, k_z = jax.random.split(key)

    n_e, channels_in = 1000, 32          # exercises codebook lane padding
    B, H, W = 2, 9, 7                    # N = 126 rows -> ragged last row tile

    # trunc_normal_(mean=0, std=1, a=-1.5, b=1.5) approximated by clipping.
    emb = jnp.clip(jax.random.normal(k_emb, (n_e, channels_in)),
                   -1.5, 1.5).astype(jnp.float32)
    z = jax.random.normal(k_z, (B, H, W, channels_in), dtype=jnp.float32)

    z_q, loss = vector_quantizer_nolinear_forward(z, emb)     # default bf16 matmul
    z2 = z.reshape(-1, channels_in)
    idx = vq_nearest_indices(z2, emb)                          # bf16 path
    idx_f32 = vq_nearest_indices(z2, emb, compute_dtype=jnp.float32)  # exact path
    jax.block_until_ready((z_q, loss, idx, idx_f32))

    assert z_q.shape == z.shape and z_q.dtype == jnp.float32
    assert loss.shape == () and float(loss) == 0.0
    assert bool(jnp.isfinite(z_q).all())
    assert idx.shape == (B * H * W,) and idx.dtype == jnp.int32
    assert bool((idx >= 0).all()) and bool((idx < n_e).all())

    # Pure-JAX reference (nearest codebook row under squared L2, HIGHEST prec).
    d_ref = (jnp.sum(z2 * z2, axis=1, keepdims=True)
             + jnp.sum(emb * emb, axis=1)[None, :]
             - 2.0 * jnp.dot(z2, emb.T, precision=jax.lax.Precision.HIGHEST))
    ref_idx = jnp.argmin(d_ref, axis=1)
    d_min = jnp.min(d_ref, axis=1)

    # f32 kernel path must match the reference argmin (tiny near-tie slack).
    mismatch_f32 = float(jnp.mean((idx_f32 != ref_idx).astype(jnp.float32)))
    assert mismatch_f32 <= 0.01, mismatch_f32

    # bf16 path: every chosen code must be (near-)optimal in true distance, and
    # gross index bugs (off-by-tile, padded entries) would blow this up by >>1.
    rows = jnp.arange(z2.shape[0])
    gap = d_ref[rows, idx] - d_min
    assert float(jnp.max(gap)) <= 1.0, float(jnp.max(gap))
    mismatch_bf16 = float(jnp.mean((idx != ref_idx).astype(jnp.float32)))
    assert mismatch_bf16 <= 0.10, mismatch_bf16

    # forward's z_q is exactly the gathered embedding rows for its indices.
    assert bool(jnp.array_equal(z_q.reshape(-1, channels_in), emb[idx]))

    print("KERNEL_OK")
</pallas_src>

<mosaic_0001>
module attributes {stable_mosaic.version = 11 : i64} {
  func.func @_vq_resident_kernel(%arg0: i32, %arg1: memref<64x32xf32, #tpu.memory_space<vmem>>, %arg2: memref<1024x32xbf16, #tpu.memory_space<vmem>>, %arg3: memref<1x1024xf32, #tpu.memory_space<vmem>>, %arg4: memref<64x1xi32, #tpu.memory_space<vmem>>) attributes {dimension_semantics = [#tpu.dimension_semantics<parallel>], iteration_bounds = array<i64: 2>, scalar_prefetch = 0 : i64, scratch_operands = 0 : i64, tpu.core_type = #tpu.core_type<tc>, window_params = [{transform_indices = @transform_0, window_bounds = array<i64: 64, 32>}, {pipeline_mode = #tpu.pipeline_mode<synchronous>, transform_indices = @transform_1, window_bounds = array<i64: 1024, 32>}, {pipeline_mode = #tpu.pipeline_mode<synchronous>, transform_indices = @transform_2, window_bounds = array<i64: 1, 1024>}, {transform_indices = @transform_3, window_bounds = array<i64: 64, 1>}]} {
    %c0 = arith.constant 0 : index
    %c0_0 = arith.constant 0 : index
    %0 = vector.load %arg1[%c0, %c0_0] : memref<64x32xf32, #tpu.memory_space<vmem>>, vector<64x32xf32>
    %1 = arith.truncf %0 : vector<64x32xf32> to vector<64x32xbf16>
    %c0_1 = arith.constant 0 : index
    %c0_2 = arith.constant 0 : index
    %2 = vector.load %arg2[%c0_1, %c0_2] : memref<1024x32xbf16, #tpu.memory_space<vmem>>, vector<1024x32xbf16>
    %cst = arith.constant dense<0.000000e+00> : vector<64x1024xf32>
    %3 = tpu.matmul %1, %2, %cst {dimension_numbers = #tpu.dot_dimension_numbers<[1], [1], [0], [0], [0, 0, 1, 0], [], []>} : vector<64x32xbf16>, vector<1024x32xbf16>, vector<64x1024xf32> -> vector<64x1024xf32>
    %c0_3 = arith.constant 0 : index
    %c0_4 = arith.constant 0 : index
    %4 = vector.load %arg3[%c0_3, %c0_4] : memref<1x1024xf32, #tpu.memory_space<vmem>>, vector<1x1024xf32>
    %cst_5 = arith.constant 2.000000e+00 : f32
    %5 = vector.broadcast %cst_5 : f32 to vector<64x1024xf32>
    %6 = arith.mulf %5, %3 : vector<64x1024xf32>
    %7 = vector.broadcast %4 : vector<1x1024xf32> to vector<64x1024xf32>
    %8 = arith.subf %7, %6 : vector<64x1024xf32>
    %cst_6 = arith.constant dense<0x7F800000> : vector<64xf32>
    %9 = vector.multi_reduction <minimumf>, %8, %cst_6 [1] : vector<64x1024xf32> to vector<64xf32>
    %10 = vector.shape_cast %9 : vector<64xf32> to vector<64x1xf32>
    %11 = tpu.iota {dimensions = array<i32: 1>} : vector<1x1024xi32>
    %12 = vector.broadcast %10 : vector<64x1xf32> to vector<64x1024xf32>
    %13 = arith.cmpf oeq, %8, %12 : vector<64x1024xf32>
    %c1024_i32 = arith.constant 1024 : i32
    %14 = vector.shape_cast %11 : vector<1x1024xi32> to vector<1x1024xi32>
    %15 = vector.broadcast %14 : vector<1x1024xi32> to vector<64x1024xi32>
    %16 = vector.broadcast %c1024_i32 : i32 to vector<64x1024xi32>
    %17 = arith.select %13, %15, %16 : vector<64x1024xi1>, vector<64x1024xi32>
    %cst_7 = arith.constant dense<2147483647> : vector<64xi32>
    %18 = vector.multi_reduction <minsi>, %17, %cst_7 [1] : vector<64x1024xi32> to vector<64xi32>
    %19 = vector.shape_cast %18 : vector<64xi32> to vector<64x1xi32>
    %c0_8 = arith.constant 0 : index
    %c0_9 = arith.constant 0 : index
    %20 = vector.load %arg4[%c0_8, %c0_9] : memref<64x1xi32, #tpu.memory_space<vmem>>, vector<64x1xi32>
    tpu.vector_store %arg4[%c0_8, %c0_9], %19 {strides = array<i32>} : memref<64x1xi32, #tpu.memory_space<vmem>>, vector<64x1xi32>,
    return
  }
  func.func @transform_0(%arg0: i32) -> (i32, i32) {
    %c0_i32 = arith.constant 0 : i32
    %c0_i32_0 = arith.constant 0 : i32
    return %arg0, %c0_i32 : i32, i32
  }
  func.func @transform_1(%arg0: i32) -> (i32, i32) {
    %c0_i32 = arith.constant 0 : i32
    %c0_i32_0 = arith.constant 0 : i32
    %c0_i32_1 = arith.constant 0 : i32
    return %c0_i32, %c0_i32_0 : i32, i32
  }
  func.func @transform_2(%arg0: i32) -> (i32, i32) {
    %c0_i32 = arith.constant 0 : i32
    %c0_i32_0 = arith.constant 0 : i32
    %c0_i32_1 = arith.constant 0 : i32
    return %c0_i32, %c0_i32_0 : i32, i32
  }
  func.func @transform_3(%arg0: i32) -> (i32, i32) {
    %c0_i32 = arith.constant 0 : i32
    %c0_i32_0 = arith.constant 0 : i32
    return %arg0, %c0_i32 : i32, i32
  }
}

</mosaic_0001>

<bundles_post_ra>
// kernel: tpu_custom_call.1
= control target key start
LH: loop header
LB: loop body
LE: loop exit
PB: predicated region body
PF: predicated region fallthrough
CT: control target
= control target key end

     0   :  { %s2119_s12 = smov 0   ;;  %s3164_s0 = inlined_call_operand.vmem [shape: f32[126,32], index: 0, kind: input, shape index: {}]   ;;  %s3165_s1 = inlined_call_operand.vmem [shape: bf16[1024,32], index: 1, kind: input, shape index: {}]   ;;  %s3166_s2 = inlined_call_operand.vmem [shape: f32[1,1024], index: 2, kind: input, shape index: {}]   ;;  %s3167_s3 = inlined_call_operand.vmem [shape: s32[126,1], index: 3, kind: output, shape index: {}]  }
   0x1 LB: > { %s1800_s13 = sadd.s32 4294967295, %s2097_s12   ;;  %p1804_p0 = scmp.ge.s32.totalorder %s2097_s12, 1  ;;  %s2097_s12 = sphi %s2119_s12, %s13_s12  }
   0x2   : > { %p138_p1 = scmp.lt.s32.totalorder %s2097_s12, 3 }
   0x4   : > { %p139_p2 = pnand %p1804_p0, %p138_p1 }
   0x6   : > { %142 = sbr.rel (%p139_p2) target bundleno = 873 (0x369), region = 32 }
   0xd   : > { %v2027_v0 = vld [vmem:[%s3165_s1 + $0x40] sm:$0xff]   ;;  %vm635_vm0 = vcmask 261120   ;;  %v2031_v5 = vld [vmem:[%s3165_s1 + $0x48] sm:$0xff]   ;;  %v2035_v11 = vld [vmem:[%s3165_s1 + $0x50] sm:$0xff]   ;;  %s1805_s11 = sshll.u32 %s1800_s13, 3 }
   0xe   : > { %v2028_v1 = vld [vmem:[%s3165_s1] sm:$0xff]   ;;  %1987 = vmatprep.subr.msk.bf16.mxu0 %vm635_vm0, %v2027_v0  ;;  %v2032_v7 = vld [vmem:[%s3165_s1 + $0x8] sm:$0xff]   ;;  %v2037_v13 = vld [vmem:[%s3165_s1 + $0xd0] sm:$0xff]   ;;  %p163_p3 = scmp.lt.s32.totalorder %s1805_s11, 15 }
   0xf   : > { %v2029_v2 = vld [vmem:[%s3165_s1 + $0xc0] sm:$0xff]   ;;  %v649_v3 = vsel %vm635_vm0, %v2028_v1, 0  ;;  %v2033_v8 = vld [vmem:[%s3165_s1 + $0xc8] sm:$0xff]   ;;  %v652_v10 = vsel %vm635_vm0, %v2032_v7, 0  ;;  %v2036_v14 = vld [vmem:[%s3165_s1 + $0x10] sm:$0xff]  }
  0x10   : > { %v2030_v4 = vld [vmem:[%s3165_s1 + $0x80] sm:$0xff]   ;;  %1892 = vmatpush3.bf16.xpose.msra.mxu0 %v649_v3  ;;  %1995 = vmatprep.subr.msk.bf16.mxu1 %vm635_vm0, %v2029_v2  ;;  %v2034_v9 = vld [vmem:[%s3165_s1 + $0x88] sm:$0xff]   ;;  %v2038_v15 = vld [vmem:[%s3165_s1 + $0x90] sm:$0xff]   ;;  %v655_v16 = vsel %vm635_vm0, %v2036_v14, 0  ;;  %s3225_s11 = smov (!%p163_p3, %s1805_s11), 15 }
  0x11   : > { %v697_v6 = vsel %vm635_vm0, %v2030_v4, 0  ;;  %1988 = vmatprep.subr.msk.bf16.mxu0 %vm635_vm0, %v2031_v5  ;;  %v700_v12 = vsel %vm635_vm0, %v2034_v9, 0  ;;  %v2039_v17 = vld [vmem:[%s3165_s1 + $0x58] sm:$0xff]   ;;  %v703_v18 = vsel %vm635_vm0, %v2038_v15, 0  ;;  %v2043_v23 = vld [vmem:[%s3165_s1 + $0x60] sm:$0xff]   ;;  %s1806_s23 = sshll.u32 %s3225_s11, 3 }
  0x12   : > { %1916 = vmatpush3.bf16.xpose.msra.mxu1 %v697_v6  ;;  %v2041_v19 = vld [vmem:[%s3165_s1 + $0xd8] sm:$0xff]   ;;  %v2045_v25 = vld [vmem:[%s3165_s1 + $0xe0] sm:$0xff]   ;;  %s2211_s30 = scalar_lea.vmem %s3164_s0, %s1806_s23  ;;  %v2047_v31 = vld [vmem:[%s3165_s1 + $0x68] sm:$0xff]   ;;  %s3143_s4 = scalar_lea.vmem %s3167_s3, %s1806_s23 }
  0x13   : > { %1996 = vmatprep.subr.msk.bf16.mxu1 %vm635_vm0, %v2033_v8  ;;  %v2040_v20 = vld [vmem:[%s3165_s1 + $0x18] sm:$0xff]   ;;  %v2044_v26 = vld [vmem:[%s3165_s1 + $0x20] sm:$0xff]   ;;  %v176_v29 = vld [vmem:[%s2211_s30 + $0x8] sm:$0xff] }
  0x14   : > { %v2042_v21 = vld [vmem:[%s3165_s1 + $0x98] sm:$0xff]   ;;  %v658_v22 = vsel %vm635_vm0, %v2040_v20, 0  ;;  %v2046_v27 = vld [vmem:[%s3165_s1 + $0xa0] sm:$0xff]   ;;  %v661_v30 = vsel %vm635_vm0, %v2044_v26, 0  ;;  %v2049_v34 = vld [vmem:[%s3165_s1 + $0xe8] sm:$0xff]  }
  0x15   : > { %v706_v24 = vsel %vm635_vm0, %v2042_v21, 0  ;;  %v175_v28 = vld [vmem:[%s2211_s30] sm:$0xff]  ;;  %v709_v33 = vsel %vm635_vm0, %v2046_v27, 0  ;;  %v2048_v35 = vld [vmem:[%s3165_s1 + $0x28] sm:$0xff]   ;;  %v2051_v38 = vld [vmem:[%s3165_s1 + $0x70] sm:$0xff]  }
  0x16   : > { %v2223_v32 = vpack.c.bf16 %v176_v29, %v175_v28  ;;  %v2050_v36 = vld [vmem:[%s3165_s1 + $0xa8] sm:$0xff]   ;;  %v664_v37 = vsel %vm635_vm0, %v2048_v35, 0  ;;  %v2053_v40 = vld [vmem:[%s3165_s1 + $0xf0] sm:$0xff]   ;;  %v2055_v44 = vld [vmem:[%s3165_s1 + $0x78] sm:$0xff]  }
  0x17   : > { %v712_v39 = vsel %vm635_vm0, %v2050_v36, 0  ;;  %v2052_v41 = vld [vmem:[%s3165_s1 + $0x30] sm:$0xff]   ;;  %v2057_v46 = vld [vmem:[%s3165_s1 + $0xf8] sm:$0xff]   ;;  %v2059_v50 = vld [vmem:[%s3165_s1 + $0x140] sm:$0xff]  }
  0x18   : > { %1894 = vmatpush3.bf16.xpose.msra.mxu0 %v652_v10  ;;  %1907 = vmatprep.mubr.msk.bf16.mxu0 %vm635_vm0, %v2223_v32  ;;  %v2054_v42 = vld [vmem:[%s3165_s1 + $0xb0] sm:$0xff]   ;;  %v667_v43 = vsel %vm635_vm0, %v2052_v41, 0  ;;  %v2056_v47 = vld [vmem:[%s3165_s1 + $0x38] sm:$0xff]   ;;  %v2060_v52 = vld [vmem:[%s3165_s1 + $0x100] sm:$0xff]  }
  0x19   : > { %1989 = vmatprep.subr.msk.bf16.mxu0 %vm635_vm0, %v2035_v11  ;;  %1931 = vmatprep.mubr.msk.bf16.mxu1 %vm635_vm0, %v2223_v32  ;;  %v715_v45 = vsel %vm635_vm0, %v2054_v42, 0  ;;  %v2058_v48 = vld [vmem:[%s3165_s1 + $0xb8] sm:$0xff]   ;;  %v670_v49 = vsel %vm635_vm0, %v2056_v47, 0  ;;  %v2061_v53 = vld [vmem:[%s3165_s1 + $0x1c0] sm:$0xff]   ;;  %v177_v54 = vld [vmem:[%s2211_s30 + $0x10] sm:$0xff]  ;;  %v745_v58 = vsel %vm635_vm0, %v2060_v52, 0 }
  0x1a   : > { %1918 = vmatpush3.bf16.xpose.msra.mxu1 %v700_v12  ;;  %v718_v51 = vsel %vm635_vm0, %v2058_v48, 0  ;;  %v178_v55 = vld [vmem:[%s2211_s30 + $0x18] sm:$0xff]  ;;  %v2062_v56 = vld [vmem:[%s3165_s1 + $0x180] sm:$0xff]   ;;  %v2063_v59 = vld [vmem:[%s3165_s1 + $0x148] sm:$0xff]  }
  0x1b   : > { %1997 = vmatprep.subr.msk.bf16.mxu1 %vm635_vm0, %v2037_v13  ;;  %v2291_v57 = vpack.c.bf16 %v178_v55, %v177_v54  ;;  %v793_v60 = vsel %vm635_vm0, %v2062_v56, 0  ;;  %v2065_v61 = vld [vmem:[%s3165_s1 + $0x1c8] sm:$0xff]   ;;  %v179_v63 = vld [vmem:[%s2211_s30 + $0x20] sm:$0xff]  ;;  %v2067_v4 = vld [vmem:[%s3165_s1 + $0x150] sm:$0xff]  }
  0x1c   : > { %v2064_v62 = vld [vmem:[%s3165_s1 + $0x108] sm:$0xff]   ;;  %v2069_v6 = vld [vmem:[%s3165_s1 + $0x1d0] sm:$0xff]   ;;  %v182_v9 = vld [vmem:[%s2211_s30 + $0x38] sm:$0xff] }
  0x1d   : > { %v180_v0 = vld [vmem:[%s2211_s30 + $0x28] sm:$0xff]  ;;  %v748_v3 = vsel %vm635_vm0, %v2064_v62, 0  ;;  %v2068_v7 = vld [vmem:[%s3165_s1 + $0x110] sm:$0xff]   ;;  %v2071_v13 = vld [vmem:[%s3165_s1 + $0x158] sm:$0xff]  }
  0x1e   : > { %v2066_v1 = vld [vmem:[%s3165_s1 + $0x188] sm:$0xff]   ;;  %v2319_v2 = vpack.c.bf16 %v180_v0, %v179_v63  ;;  %v181_v8 = vld [vmem:[%s2211_s30 + $0x30] sm:$0xff]  ;;  %v751_v12 = vsel %vm635_vm0, %v2068_v7, 0  ;;  %v2073_v15 = vld [vmem:[%s3165_s1 + $0x1d8] sm:$0xff]  }
  0x1f   : > { %v796_v5 = vsel %vm635_vm0, %v2066_v1, 0  ;;  %v2070_v10 = vld [vmem:[%s3165_s1 + $0x190] sm:$0xff]   ;;  %v2347_v11 = vpack.c.bf16 %v182_v9, %v181_v8  ;;  %v2077_v21 = vld [vmem:[%s3165_s1 + $0x1e0] sm:$0xff]   ;;  %v2081_v27 = vld [vmem:[%s3165_s1 + $0x1e8] sm:$0xff]  }
  0x20   : > { %1896 = vmatpush3.bf16.xpose.msra.mxu0 %v655_v16  ;;  %v799_v14 = vsel %vm635_vm0, %v2070_v10, 0  ;;  %v2072_v16 = vld [vmem:[%s3165_s1 + $0x118] sm:$0xff]   ;;  %v2080_v28 = vld [vmem:[%s3165_s1 + $0x128] sm:$0xff]   ;;  %v2084_v35 = vld [vmem:[%s3165_s1 + $0x130] sm:$0xff]  }
  0x21   : > { %1990 = vmatprep.subr.msk.bf16.mxu0 %vm635_vm0, %v2039_v17  ;;  %v2074_v17 = vld [vmem:[%s3165_s1 + $0x198] sm:$0xff]   ;;  %v2082_v29 = vld [vmem:[%s3165_s1 + $0x1a8] sm:$0xff]   ;;  %v2086_v36 = vld [vmem:[%s3165_s1 + $0x1b0] sm:$0xff]  }
  0x22   : > { %1920 = vmatpush3.bf16.xpose.msra.mxu1 %v703_v18  ;;  %v754_v18 = vsel %vm635_vm0, %v2072_v16, 0  ;;  %v802_v20 = vsel %vm635_vm0, %v2074_v17, 0  ;;  %v2088_v41 = vld [vmem:[%s3165_s1 + $0x138] sm:$0xff]  }
  0x23   : > { %1998 = vmatprep.subr.msk.bf16.mxu1 %vm635_vm0, %v2041_v19  ;;  %v2075_v19 = vld [vmem:[%s3165_s1 + $0x160] sm:$0xff]   ;;  %v2090_v42 = vld [vmem:[%s3165_s1 + $0x1b8] sm:$0xff]  }
  0x28   : > { %1898 = vmatpush3.bf16.xpose.msra.mxu0 %v658_v22  ;;  %v2076_v22 = vld [vmem:[%s3165_s1 + $0x120] sm:$0xff]  }
  0x29   : > { %1991 = vmatprep.subr.msk.bf16.mxu0 %vm635_vm0, %v2043_v23  ;;  %v2078_v23 = vld [vmem:[%s3165_s1 + $0x1a0] sm:$0xff]  }
  0x2a   : > { %1922 = vmatpush3.bf16.xpose.msra.mxu1 %v706_v24  ;;  %v757_v24 = vsel %vm635_vm0, %v2076_v22, 0  ;;  %v805_v26 = vsel %vm635_vm0, %v2078_v23, 0 }
  0x2b   : > { %1999 = vmatprep.subr.msk.bf16.mxu1 %vm635_vm0, %v2045_v25  ;;  %v2079_v25 = vld [vmem:[%s3165_s1 + $0x168] sm:$0xff]  }
  0x30   : > { %1900 = vmatpush3.bf16.xpose.msra.mxu0 %v661_v30  ;;  %v760_v30 = vsel %vm635_vm0, %v2080_v28, 0 }
  0x31   : > { %1992 = vmatprep.subr.msk.bf16.mxu0 %vm635_vm0, %v2047_v31  ;;  %v2083_v31 = vld [vmem:[%s3165_s1 + $0x170] sm:$0xff]  }
  0x32   : > { %1924 = vmatpush3.bf16.xpose.msra.mxu1 %v709_v33  ;;  %v808_v33 = vsel %vm635_vm0, %v2082_v29, 0 }
  0x33   : > { %2000 = vmatprep.subr.msk.bf16.mxu1 %vm635_vm0, %v2049_v34  ;;  %v2085_v34 = vld [vmem:[%s3165_s1 + $0x1f0] sm:$0xff]  }
  0x38   : > { %1902 = vmatpush3.bf16.xpose.msra.mxu0 %v664_v37  ;;  %v763_v37 = vsel %vm635_vm0, %v2084_v35, 0 }
  0x39   : > { %1993 = vmatprep.subr.msk.bf16.mxu0 %vm635_vm0, %v2051_v38  ;;  %v2087_v38 = vld [vmem:[%s3165_s1 + $0x178] sm:$0xff]  }
  0x3a   : > { %1926 = vmatpush3.bf16.xpose.msra.mxu1 %v712_v39  ;;  %v811_v39 = vsel %vm635_vm0, %v2086_v36, 0 }
  0x3b   : > { %2001 = vmatprep.subr.msk.bf16.mxu1 %vm635_vm0, %v2053_v40  ;;  %v2089_v40 = vld [vmem:[%s3165_s1 + $0x1f8] sm:$0xff]  }
  0x40   : > { %1904 = vmatpush3.bf16.xpose.msra.mxu0 %v667_v43  ;;  %v766_v43 = vsel %vm635_vm0, %v2088_v41, 0 }
  0x41   : > { %1994 = vmatprep.subr.msk.bf16.mxu0 %vm635_vm0, %v2055_v44  ;;  %v814_v44 = vsel %vm635_vm0, %v2090_v42, 0 }
  0x42   : > { %1928 = vmatpush3.bf16.xpose.msra.mxu1 %v715_v45 }
  0x43   : > { %2002 = vmatprep.subr.msk.bf16.mxu1 %vm635_vm0, %v2057_v46 }
  0x48   : > { %1906 = vmatpush3.bf16.xpose.msra.mxu0 %v670_v49 }
  0x49   : > { %2003 = vmatprep.subr.msk.bf16.mxu0 %vm635_vm0, %v2059_v50 }
  0x4a   : > { %1930 = vmatpush3.bf16.xpose.msra.mxu1 %v718_v51 }
  0x4b   : > { %2011 = vmatprep.subr.msk.bf16.mxu1 %vm635_vm0, %v2061_v53 }
  0x4f   : > { %1908 = vmatmul.mubr.msk.bf16.vlgmr.msra.gmra.mrb[0].mxu0 %vm635_vm0, %v2223_v32 }
  0x50   : > { %1940 = vmatpush3.bf16.xpose.msra.mxu0 %v745_v58  ;;  %1909 = vmatprep.mubr.msk.bf16.mxu0 %vm635_vm0, %v2291_v57 }
  0x51   : > { %1932 = vmatmul.mubr.msk.bf16.vlgmr.msra.gmra.mrb[0].mxu1 %vm635_vm0, %v2223_v32  ;;  %2004 = vmatprep.subr.msk.bf16.mxu0 %vm635_vm0, %v2063_v59 }
  0x52   : > { %1964 = vmatpush3.bf16.xpose.msra.mxu1 %v793_v60  ;;  %1933 = vmatprep.mubr.msk.bf16.mxu1 %vm635_vm0, %v2291_v57 }
  0x53   : > { %2012 = vmatprep.subr.msk.bf16.mxu1 %vm635_vm0, %v2065_v61 }
  0x57   : > { %1910 = vmatmul.mubr.msk.bf16.gmra.mrb[4].mxu0 %vm635_vm0, %v2291_v57 }
  0x58   : > { %1942 = vmatpush3.bf16.xpose.msra.mxu0 %v748_v3  ;;  %1911 = vmatprep.mubr.msk.bf16.mxu0 %vm635_vm0, %v2319_v2 }
  0x59   : > { %2005 = vmatprep.subr.msk.bf16.mxu0 %vm635_vm0, %v2067_v4  ;;  %1934 = vmatmul.mubr.msk.bf16.gmra.mrb[4].mxu1 %vm635_vm0, %v2291_v57 }
  0x5a   : > { %1966 = vmatpush3.bf16.xpose.msra.mxu1 %v796_v5  ;;  %1935 = vmatprep.mubr.msk.bf16.mxu1 %vm635_vm0, %v2319_v2 }
  0x5b   : > { %2013 = vmatprep.subr.msk.bf16.mxu1 %vm635_vm0, %v2069_v6 }
  0x5f   : > { %1912 = vmatmul.mubr.msk.bf16.gmra.mrb[8].mxu0 %vm635_vm0, %v2319_v2 }
  0x60   : > { %1944 = vmatpush3.bf16.xpose.msra.mxu0 %v751_v12  ;;  %1913 = vmatprep.mubr.msk.bf16.mxu0 %vm635_vm0, %v2347_v11  ;;  %v3168_v12 = vlaneseq }
  0x61   : > { %2006 = vmatprep.subr.msk.bf16.mxu0 %vm635_vm0, %v2071_v13  ;;  %1936 = vmatmul.mubr.msk.bf16.gmra.mrb[8].mxu1 %vm635_vm0, %v2319_v2 }
  0x62   : > { %1968 = vmatpush3.bf16.xpose.msra.mxu1 %v799_v14  ;;  %1937 = vmatprep.mubr.msk.bf16.mxu1 %vm635_vm0, %v2347_v11  ;;  %v2504_v13 = vshrl.u32 %v3168_v12, 7 }
  0x63   : > { %2014 = vmatprep.subr.msk.bf16.mxu1 %vm635_vm0, %v2073_v15  ;;  %v2510_v15 = vld [vmem:[%s3166_s2] sm:$0xff] }
  0x64   : > { %v1200_v14 = vsub.s32 0, %v2504_v13  ;;  %v1204_v16 = vsub.s32 1, %v2504_v13  ;;  %v1208_v17 = vsub.s32 2, %v2504_v13 }
  0x66   : > { %v2519_v22 = vrot.slane %v2510_v15, %v1204_v16 }
  0x67   : > { %1914 = vmatmul.mubr.msk.bf16.gmra.mrb[12].mxu0 %vm635_vm0, %v2347_v11 }
  0x68   : > { %1946 = vmatpush3.bf16.xpose.msra.mxu0 %v754_v18  ;;  %1955 = vmatprep.mubr.msk.bf16.mxu0 %vm635_vm0, %v2223_v32  ;;  %v1212_v18 = vsub.s32 3, %v2504_v13 }
  0x69   : > { %2007 = vmatprep.subr.msk.bf16.mxu0 %vm635_vm0, %v2075_v19  ;;  %1938 = vmatmul.mubr.msk.bf16.gmra.mrb[12].mxu1 %vm635_vm0, %v2347_v11 }
  0x6a   : > { %1970 = vmatpush3.bf16.xpose.msra.mxu1 %v802_v20  ;;  %1979 = vmatprep.mubr.msk.bf16.mxu1 %vm635_vm0, %v2223_v32  ;;  %v2516_v20 = vrot.slane %v2510_v15, %v1200_v14  ;;  %v2525_v28 = vrot.slane %v2510_v15, %v1212_v18 }
  0x6b   : > { %2015 = vmatprep.subr.msk.bf16.mxu1 %vm635_vm0, %v2077_v21 }
  0x70   : > { %1948 = vmatpush3.bf16.xpose.msra.mxu0 %v757_v24 }
  0x71   : > { %2008 = vmatprep.subr.msk.bf16.mxu0 %vm635_vm0, %v2079_v25 }
  0x72   : > { %1972 = vmatpush3.bf16.xpose.msra.mxu1 %v805_v26 }
  0x73   : > { %2016 = vmatprep.subr.msk.bf16.mxu1 %vm635_vm0, %v2081_v27  ;;  %v2522_v27 = vrot.slane %v2510_v15, %v1208_v17 }
  0x78   : > { %1950 = vmatpush3.bf16.xpose.msra.mxu0 %v760_v30 }
  0x79   : > { %2009 = vmatprep.subr.msk.bf16.mxu0 %vm635_vm0, %v2083_v31 }
  0x7a   : > { %1974 = vmatpush3.bf16.xpose.msra.mxu1 %v808_v33 }
  0x7b   : > { %2017 = vmatprep.subr.msk.bf16.mxu1 %vm635_vm0, %v2085_v34 }
  0x80   : > { %1952 = vmatpush3.bf16.xpose.msra.mxu0 %v763_v37 }
  0x81   : > { %2010 = vmatprep.subr.msk.bf16.mxu0 %vm635_vm0, %v2087_v38 }
  0x82   : > { %1976 = vmatpush3.bf16.xpose.msra.mxu1 %v811_v39 }
  0x83   : > { %2018 = vmatprep.subr.msk.bf16.mxu1 %vm635_vm0, %v2089_v40 }
  0x88   : > { %1954 = vmatpush3.bf16.xpose.msra.mxu0 %v766_v43  ;;  %v1216_v43 = vsub.s32 4, %v2504_v13 }
  0x8a   : > { %1978 = vmatpush3.bf16.xpose.msra.mxu1 %v814_v44 }
  0x8f   : > { %1956 = vmatmul.mubr.msk.bf16.vlgmr.msra.gmra.mrb[16].mxu0 %vm635_vm0, %v2223_v32 }
  0x90   : > { %1957 = vmatprep.mubr.msk.bf16.mxu0 %vm635_vm0, %v2291_v57 }
  0x91   : > { %1980 = vmatmul.mubr.msk.bf16.vlgmr.msra.gmra.mrb[16].mxu1 %vm635_vm0, %v2223_v32 }
  0x92   : > { %1981 = vmatprep.mubr.msk.bf16.mxu1 %vm635_vm0, %v2291_v57 }
  0x97   : > { %1958 = vmatmul.mubr.msk.bf16.gmra.mrb[20].mxu0 %vm635_vm0, %v2291_v57 }
  0x98   : > { %1959 = vmatprep.mubr.msk.bf16.mxu0 %vm635_vm0, %v2319_v2 }
  0x99   : > { %1982 = vmatmul.mubr.msk.bf16.gmra.mrb[20].mxu1 %vm635_vm0, %v2291_v57 }
  0x9a   : > { %1983 = vmatprep.mubr.msk.bf16.mxu1 %vm635_vm0, %v2319_v2 }
  0x9f   : > { %1960 = vmatmul.mubr.msk.bf16.gmra.mrb[24].mxu0 %vm635_vm0, %v2319_v2 }
  0xa0   : > { %1961 = vmatprep.mubr.msk.bf16.mxu0 %vm635_vm0, %v2347_v11 }
  0xa1   : > { %1984 = vmatmul.mubr.msk.bf16.gmra.mrb[24].mxu1 %vm635_vm0, %v2319_v2 }
  0xa2   : > { %1985 = vmatprep.mubr.msk.bf16.mxu1 %vm635_vm0, %v2347_v11 }
  0xa7   : > { %1962 = vmatmul.mubr.msk.bf16.gmra.mrb[28].mxu0 %vm635_vm0, %v2347_v11 }
  0xa9   : > { %1986 = vmatmul.mubr.msk.bf16.gmra.mrb[28].mxu1 %vm635_vm0, %v2347_v11 }
 0x122   : > { %v874_v32 = vpop.f32.mrb[0].mxu0 }
 0x123   : > { %v876_v45 = vpop.f32.mrb[1].mxu0  ;;  %v1133_v19 = vmul.f32 2.0, %v874_v32 }
 0x124   : > { %v878_v46 = vpop.f32.mrb[2].mxu0  ;;  %v947_v47 = vpop.f32.mrb[0].mxu1  ;;  %v1134_v21 = vmul.f32 2.0, %v876_v45 }
 0x125   : > { %v880_v48 = vpop.f32.mrb[3].mxu0  ;;  %v949_v49 = vpop.f32.mrb[1].mxu1  ;;  %v1141_v23 = vmul.f32 2.0, %v878_v46  ;;  %v2528_v31 = vsub.f32 %v2516_v20, %v1133_v19  ;;  %v1135_v33 = vmul.f32 2.0, %v947_v47  ;;  %v1220_v46 = vsub.s32 5, %v2504_v13 }
 0x126   : > { %v951_v50 = vpop.f32.mrb[2].mxu1  ;;  %v1142_v24 = vmul.f32 2.0, %v880_v48  ;;  %v2531_v36 = vsub.f32 %v2519_v22, %v1134_v21  ;;  %v1136_v47 = vmul.f32 2.0, %v949_v49 }
 0x127   : > { %v2475_v51 = vpop.f32.mrb[3].mxu1  ;;  %v2534_v37 = vsub.f32 %v2516_v20, %v1141_v23  ;;  %v1143_v39 = vmul.f32 2.0, %v951_v50 }
 0x128   : > { %v2537_v38 = vsub.f32 %v2519_v22, %v1142_v24  ;;  %v1144_v18 = vmul.f32 2.0, %v2475_v51  ;;  %v2590_v23 = vsub.f32 %v2525_v28, %v1136_v47  ;;  %v1224_v24 = vsub.s32 6, %v2504_v13 }
 0x12a   : > { %v884_v52 = vpop.f32.mrb[4].mxu0  ;;  %v2631_v47 = vrot.slane %v2510_v15, %v1224_v24 }
 0x12b   : > { %v886_v53 = vpop.f32.mrb[5].mxu0  ;;  %v1149_v25 = vmul.f32 2.0, %v884_v52 }
 0x12c   : > { %v888_v54 = vpop.f32.mrb[6].mxu0  ;;  %v957_v55 = vpop.f32.mrb[4].mxu1  ;;  %v1150_v26 = vmul.f32 2.0, %v886_v53  ;;  %v1302_v53 = vmin.f32 %v2528_v31, %v2531_v36 }
 0x12d   : > { %v890_v56 = vpop.f32.mrb[7].mxu0  ;;  %v2477_v57 = vpop.f32.mrb[5].mxu1  ;;  %v1157_v29 = vmul.f32 2.0, %v888_v54  ;;  %v2540_v40 = vsub.f32 %v2516_v20, %v1149_v25  ;;  %v1151_v42 = vmul.f32 2.0, %v957_v55  ;;  %v2562_v54 = vsub.f32 %v2522_v27, %v1135_v33 }
 0x12e   : > { %v961_v58 = vpop.f32.mrb[6].mxu1  ;;  %v1158_v30 = vmul.f32 2.0, %v890_v56  ;;  %v2543_v41 = vsub.f32 %v2519_v22, %v1150_v26  ;;  %v1311_v55 = vmin.f32 %v2534_v37, %v2537_v38  ;;  %v2567_v56 = vsub.f32 %v2522_v27, %v1143_v39 }
 0x12f   : > { %v963_v59 = vpop.f32.mrb[7].mxu1  ;;  %v2547_v44 = vsub.f32 %v2516_v20, %v1157_v29  ;;  %v1159_v45 = vmul.f32 2.0, %v961_v58  ;;  %v2572_v58 = vsub.f32 %v2522_v27, %v1151_v42  ;;  %v2615_v33 = vsub.f32 %v2525_v28, %v1144_v18 }
 0x130   : > { %v2550_v32 = vsub.f32 %v2519_v22, %v1158_v30  ;;  %v1320_v49 = vmin.f32 %v2540_v40, %v2543_v41  ;;  %v2625_v42 = vrot.slane %v2510_v15, %v1216_v43 }
 0x131   : > { %v2578_v14 = vsub.f32 %v2522_v27, %v1159_v45  ;;  %v2628_v45 = vrot.slane %v2510_v15, %v1220_v46 }
 0x132   : > { %v894_v60 = vpop.f32.mrb[8].mxu0  ;;  %v2596_v51 = vmin.f32 %v1320_v49, %v2572_v58 }
 0x133   : > { %v896_v61 = vpop.f32.mrb[9].mxu0  ;;  %v1165_v34 = vmul.f32 2.0, %v894_v60  ;;  %v1152_v60 = vmul.f32 2.0, %v2477_v57 }
 0x134   : > { %v2479_v62 = vpop.f32.mrb[10].mxu0  ;;  %v967_v63 = vpop.f32.mrb[8].mxu1  ;;  %v1166_v35 = vmul.f32 2.0, %v896_v61  ;;  %v1160_v61 = vmul.f32 2.0, %v963_v59  ;;  %v1303_v59 = vmin.f32 %v1302_v53, %v2562_v54 }
 0x135   : > { %v900_v0 = vpop.f32.mrb[11].mxu0  ;;  %v2481_v1 = vpop.f32.mrb[9].mxu1  ;;  %v2554_v48 = vsub.f32 %v2516_v20, %v1165_v34  ;;  %v1167_v52 = vmul.f32 2.0, %v967_v63  ;;  %v1329_v63 = vmin.f32 %v2547_v44, %v2550_v32  ;;  %v1173_v16 = vmul.f32 2.0, %v2479_v62 }
 0x136   : > { %v2483_v2 = vpop.f32.mrb[10].mxu1  ;;  %v2557_v50 = vsub.f32 %v2519_v22, %v1166_v35  ;;  %v1174_v17 = vmul.f32 2.0, %v900_v0  ;;  %v1168_v57 = vmul.f32 2.0, %v2481_v1  ;;  %v1228_v62 = vsub.s32 7, %v2504_v13 }
 0x137   : > { %v2485_v3 = vpop.f32.mrb[11].mxu1  ;;  %3186 = vst [vmem:[#allocation2_spill] sm:$0xff] %v2554_v48  ;;  %v2585_v21 = vsub.f32 %v2522_v27, %v1167_v52  ;;  %v1312_v0 = vmin.f32 %v1311_v55, %v2567_v56  ;;  %v2599_v25 = vsub.f32 %v2525_v28, %v1152_v60  ;;  %v2602_v26 = vsub.f32 %v2525_v28, %v1160_v61 }
 0x138   : > { %3187 = vst [vmem:[#allocation3_spill] sm:$0xff] %v2557_v50  ;;  %v1338_v19 = vmin.f32 %v2554_v48, %v2557_v50  ;;  %v2605_v1 = vmin.f32 %v1329_v63, %v2578_v14  ;;  %v2608_v29 = vsub.f32 %v2516_v20, %v1173_v16  ;;  %v2611_v30 = vsub.f32 %v2519_v22, %v1174_v17 }
 0x139   : > { %3188 = vst [vmem:[#allocation4_spill] sm:$0xff] %v2585_v21  ;;  %v1175_v13 = vmul.f32 2.0, %v2483_v2  ;;  %v2621_v35 = vsub.f32 %v2525_v28, %v1168_v57  ;;  %v1176_v39 = vmul.f32 2.0, %v2485_v3  ;;  %v1304_v2 = vmin.f32 %v1303_v59, %v2590_v23 }
 0x13a   : > { %v2487_v4 = vpop.f32.mrb[12].mxu0  ;;  %3189 = vst [vmem:[#allocation5_spill] sm:$0xff] %v2608_v29  ;;  %3190 = vst [vmem:[#allocation6_spill] sm:$0xff] %v2611_v30  ;;  %v2618_v34 = vmin.f32 %v1338_v19, %v2585_v21  ;;  %v1313_v52 = vmin.f32 %v1312_v0, %v2615_v33  ;;  %v2638_v49 = vrot.slane %v2510_v15, %v1228_v62 }
 0x13b   : > { %v2489_v5 = vpop.f32.mrb[13].mxu0  ;;  %v1347_v43 = vmin.f32 %v2608_v29, %v2611_v30  ;;  %v2645_v46 = vsub.f32 %v2522_v27, %v1175_v13  ;;  %v2650_v16 = vsub.f32 %v2525_v28, %v1176_v39  ;;  %v1181_v15 = vmul.f32 2.0, %v2487_v4 }
 0x13c   : > { %v2491_v6 = vpop.f32.mrb[14].mxu0  ;;  %v2493_v7 = vpop.f32.mrb[12].mxu1  ;;  %v1182_v57 = vmul.f32 2.0, %v2489_v5 }
 0x13d   : > { %v2495_v8 = vpop.f32.mrb[15].mxu0  ;;  %v2497_v9 = vpop.f32.mrb[13].mxu1  ;;  %3191 = vst [vmem:[#allocation7_spill] sm:$0xff] %v2645_v46  ;;  %3192 = vst [vmem:[#allocation8_spill] sm:$0xff] %v2650_v16  ;;  %v1183_v12 = vmul.f32 2.0, %v2493_v7  ;;  %v2670_v3 = vmin.f32 %v1347_v43, %v2645_v46 }
 0x13e   : > { %v2499_v10 = vpop.f32.mrb[14].mxu1 }
 0x13f   : > { %v2501_v11 = vpop.f32.mrb[15].mxu1  ;;  %v2688_v43 = vsub.f32 %v2522_v27, %v1183_v12 }
 0x141   : > { %3196 = vst [vmem:[#allocation12_spill] sm:$0xff] %v2688_v43 }
 0x162   : > { %v1020_v55 = vpop.f32.mrb[16].mxu0 }
 0x163   : > { %v1137_v60 = vmul.f32 2.0, %v1020_v55  ;;  %v1022_v61 = vpop.f32.mrb[17].mxu0  ;;  %v1189_v55 = vmul.f32 2.0, %v2491_v6  ;;  %v1190_v6 = vmul.f32 2.0, %v2495_v8  ;;  %v1184_v8 = vmul.f32 2.0, %v2497_v9 }
 0x164   : > { %v1138_v17 = vmul.f32 2.0, %v1022_v61  ;;  %v1093_v18 = vpop.f32.mrb[16].mxu1  ;;  %v1024_v19 = vpop.f32.mrb[18].mxu0 }
 0x165   : > { %v2655_v59 = vsub.f32 %v2625_v42, %v1137_v60  ;;  %v1139_v24 = vmul.f32 2.0, %v1093_v18  ;;  %v1145_v62 = vmul.f32 2.0, %v1024_v19  ;;  %v1095_v0 = vpop.f32.mrb[17].mxu1  ;;  %v1026_v13 = vpop.f32.mrb[19].mxu0 }
 0x166   : > { %v2660_v39 = vsub.f32 %v2628_v45, %v1138_v17  ;;  %v1146_v4 = vmul.f32 2.0, %v1026_v13  ;;  %v1097_v61 = vpop.f32.mrb[18].mxu1  ;;  %v1140_v18 = vmul.f32 2.0, %v1095_v0  ;;  %v2677_v13 = vsub.f32 %v2516_v20, %v1181_v15 }
 0x167   : > { %v1305_v63 = vmin.f32 %v1304_v2, %v2655_v59  ;;  %v2664_v5 = vsub.f32 %v2631_v47, %v1139_v24  ;;  %v2667_v60 = vsub.f32 %v2625_v42, %v1145_v62  ;;  %v1099_v19 = vpop.f32.mrb[19].mxu1  ;;  %v1147_v17 = vmul.f32 2.0, %v1097_v61 }
 0x168   : > { %v2674_v7 = vsub.f32 %v2628_v45, %v1146_v4  ;;  %3193 = vst [vmem:[#allocation9_spill] sm:$0xff] %v2677_v13  ;;  %v2680_v2 = vsub.f32 %v2519_v22, %v1182_v57  ;;  %v2685_v0 = vsub.f32 %v2516_v20, %v1189_v55  ;;  %v1148_v4 = vmul.f32 2.0, %v1099_v19 }
 0x169   : > { %v1314_v24 = vmin.f32 %v1313_v52, %v2667_v60  ;;  %v1306_v62 = vmin.f32 %v1305_v63, %v2660_v39  ;;  %v2693_v57 = vsub.f32 %v2638_v49, %v1140_v18  ;;  %v2697_v63 = vsub.f32 %v2519_v22, %v1190_v6 }
 0x16a   : > { %3194 = vst [vmem:[#allocation10_spill] sm:$0xff] %v2680_v2  ;;  %3195 = vst [vmem:[#allocation11_spill] sm:$0xff] %v2685_v0  ;;  %v1030_v61 = vpop.f32.mrb[20].mxu0  ;;  %v1191_v20 = vmul.f32 2.0, %v2499_v10  ;;  %v2701_v12 = vsub.f32 %v2631_v47, %v1147_v17  ;;  %v2708_v22 = vsub.f32 %v2638_v49, %v1148_v4 }
 0x16b   : > { %v1315_v15 = vmin.f32 %v1314_v24, %v2674_v7  ;;  %v1153_v53 = vmul.f32 2.0, %v1030_v61  ;;  %v1032_v46 = vpop.f32.mrb[21].mxu0  ;;  %v1307_v52 = vmin.f32 %v1306_v62, %v2664_v5  ;;  %3197 = vst [vmem:[#allocation13_spill] sm:$0xff] %v2697_v63 }
 0x16c   : > { %v1154_v9 = vmul.f32 2.0, %v1032_v46  ;;  %v1103_v55 = vpop.f32.mrb[20].mxu1  ;;  %v1034_v19 = vpop.f32.mrb[22].mxu0 }
 0x16d   : > { %v2704_v24 = vsub.f32 %v2625_v42, %v1153_v53  ;;  %v1155_v61 = vmul.f32 2.0, %v1103_v55  ;;  %v1161_v30 = vmul.f32 2.0, %v1034_v19  ;;  %v1105_v18 = vpop.f32.mrb[21].mxu1  ;;  %v1036_v29 = vpop.f32.mrb[23].mxu0  ;;  %v1308_v62 = vmin.f32 %v1307_v52, %v2693_v57 }
 0x16e   : > { %v2711_v10 = vsub.f32 %v2628_v45, %v1154_v9  ;;  %v1162_v6 = vmul.f32 2.0, %v1036_v29  ;;  %v1107_v17 = vpop.f32.mrb[22].mxu1  ;;  %v1316_v46 = vmin.f32 %v1315_v15, %v2701_v12  ;;  %v3198_v53 = vmin.f32 %v2596_v51, %v2599_v25 }
 0x16f   : > { %v2719_v19 = vsub.f32 %v2631_v47, %v1155_v61  ;;  %v2722_v52 = vsub.f32 %v2625_v42, %v1161_v30  ;;  %v1156_v4 = vmul.f32 2.0, %v1105_v18  ;;  %v1109_v21 = vpop.f32.mrb[23].mxu1  ;;  %1309 = vmin.xlane.f32.xlu0 %v1308_v62  ;;  %v1356_v29 = vmin.f32 %v2677_v13, %v2680_v2 }
 0x170   : > { %v1323_v55 = vmin.f32 %v3198_v53, %v2704_v24  ;;  %v1192_v9 = vmul.f32 2.0, %v2501_v11  ;;  %v2728_v15 = vsub.f32 %v2628_v45, %v1162_v6  ;;  %v1163_v50 = vmul.f32 2.0, %v1107_v17 }
 0x171   : > { %v1349_v51 = vmin.f32 %v2670_v3, %v2650_v16  ;;  %v3199_v30 = vmin.f32 %v2605_v1, %v2602_v26  ;;  %v1317_v18 = vmin.f32 %v1316_v46, %v2708_v22  ;;  %v1365_v53 = vmin.f32 %v2685_v0, %v2697_v63 }
 0x172   : > { %v1324_v62 = vmin.f32 %v1323_v55, %v2711_v10  ;;  %v2741_v11 = vsub.f32 %v2525_v28, %v1184_v8  ;;  %v2744_v6 = vsub.f32 %v2522_v27, %v1191_v20  ;;  %v1164_v17 = vmul.f32 2.0, %v1109_v21  ;;  %v1040_v3 = vpop.f32.mrb[24].mxu0 }
 0x173   : > { %v1332_v61 = vmin.f32 %v3199_v30, %v2722_v52  ;;  %v1169_v13 = vmul.f32 2.0, %v1040_v3  ;;  %1318 = vmin.xlane.f32.xlu0 %v1317_v18  ;;  %v1042_v1 = vpop.f32.mrb[25].mxu0  ;;  %v2748_v46 = vsub.f32 %v2638_v49, %v1156_v4  ;;  %v1357_v30 = vmin.f32 %v1356_v29, %v2688_v43 }
 0x174   : > { %3200 = vst [vmem:[#allocation14_spill] sm:$0xff] %v2741_v11  ;;  %3201 = vst [vmem:[#allocation15_spill] sm:$0xff] %v2744_v6  ;;  %v1325_v55 = vmin.f32 %v1324_v62, %v2719_v19  ;;  %v2753_v8 = vsub.f32 %v2525_v28, %v1192_v9  ;;  %v2756_v27 = vsub.f32 %v2631_v47, %v1163_v50  ;;  %v1113_v21 = vpop.f32.mrb[24].mxu1  ;;  %v1170_v20 = vmul.f32 2.0, %v1042_v1  ;;  %v1044_v63 = vpop.f32.mrb[26].mxu0 }
 0x175   : > { %v1333_v2 = vmin.f32 %v1332_v61, %v2728_v15  ;;  %v2759_v61 = vsub.f32 %v2625_v42, %v1169_v13  ;;  %v1171_v18 = vmul.f32 2.0, %v1113_v21  ;;  %v1177_v3 = vmul.f32 2.0, %v1044_v63  ;;  %v1115_v4 = vpop.f32.mrb[25].mxu1  ;;  %v1046_v0 = vpop.f32.mrb[27].mxu0 }
 0x176   : > { %3202 = vst [vmem:[#allocation16_spill] sm:$0xff] %v2753_v8  ;;  %v1326_v62 = vmin.f32 %v1325_v55, %v2748_v46  ;;  %v2763_v29 = vsub.f32 %v2638_v49, %v1164_v17  ;;  %v2766_v28 = vsub.f32 %v2628_v45, %v1170_v20  ;;  %v1178_v50 = vmul.f32 2.0, %v1046_v0  ;;  %v1117_v9 = vpop.f32.mrb[26].mxu1 }
 0x177   : > { %v1334_v1 = vmin.f32 %v1333_v2, %v2756_v27  ;;  %v3203_v13 = vmin.f32 %v2618_v34, %v2621_v35  ;;  %v2774_v63 = vsub.f32 %v2631_v47, %v1171_v18  ;;  %v2777_v55 = vsub.f32 %v2625_v42, %v1177_v3  ;;  %v1119_v43 = vpop.f32.mrb[27].mxu1 }
 0x178   : > { %v1172_v17 = vmul.f32 2.0, %v1115_v4  ;;  %1327 = vmin.xlane.f32.xlu1 %v1326_v62  ;;  %v1366_v20 = vmin.f32 %v1365_v53, %v2744_v6  ;;  %v2781_v0 = vsub.f32 %v2628_v45, %v1178_v50  ;;  %v1179_v2 = vmul.f32 2.0, %v1117_v9 }
 0x179   : > { %v1341_v21 = vmin.f32 %v3203_v13, %v2759_v61  ;;  %3204 = vst [vmem:[#allocation17_spill] sm:$0xff] %v2777_v55  ;;  %v1180_v16 = vmul.f32 2.0, %v1119_v43  ;;  %v1350_v34 = vmin.f32 %v1349_v51, %v2777_v55  ;;  %v1335_v18 = vmin.f32 %v1334_v1, %v2763_v29 }
 0x17a   : > { %3205 = vst [vmem:[#allocation18_spill] sm:$0xff] %v2781_v0  ;;  %v1358_v13 = vmin.f32 %v1357_v30, %v2741_v11  ;;  %v1050_v3 = vpop.f32.mrb[28].mxu0  ;;  %v2788_v4 = vsub.f32 %v2638_v49, %v1172_v17  ;;  %v1367_v43 = vmin.f32 %v1366_v20, %v2753_v8 }
 0x17b   : > { %v1342_v48 = vmin.f32 %v1341_v21, %v2766_v28  ;;  %v1351_v62 = vmin.f32 %v1350_v34, %v2781_v0  ;;  %v1185_v53 = vmul.f32 2.0, %v1050_v3  ;;  %v1052_v50 = vpop.f32.mrb[29].mxu0  ;;  %v2794_v21 = vsub.f32 %v2631_v47, %v1179_v2 }
 0x17c   : > { %1336 = vmin.xlane.f32.xlu1 %v1335_v18  ;;  %v2797_v51 = vsub.f32 %v2638_v49, %v1180_v16  ;;  %v1123_v30 = vpop.f32.mrb[28].mxu1  ;;  %v1186_v1 = vmul.f32 2.0, %v1052_v50  ;;  %v1054_v6 = vpop.f32.mrb[30].mxu0 }
 0x17d   : > { %v1343_v9 = vmin.f32 %v1342_v48, %v2774_v63  ;;  %v2800_v17 = vsub.f32 %v2625_v42, %v1185_v53  ;;  %v1187_v34 = vmul.f32 2.0, %v1123_v30  ;;  %v1193_v3 = vmul.f32 2.0, %v1054_v6  ;;  %v1125_v18 = vpop.f32.mrb[29].mxu1  ;;  %v1056_v11 = vpop.f32.mrb[31].mxu0 }
 0x17e   : > { %v2804_v20 = vsub.f32 %v2628_v45, %v1186_v1  ;;  %v1188_v2 = vmul.f32 2.0, %v1125_v18  ;;  %v1194_v8 = vmul.f32 2.0, %v1056_v11  ;;  %v1127_v0 = vpop.f32.mrb[30].mxu1  ;;  %v1352_v16 = vmin.f32 %v1351_v62, %v2794_v21 }
 0x17f   : > { %v1344_v48 = vmin.f32 %v1343_v9, %v2788_v4  ;;  %v1359_v50 = vmin.f32 %v1358_v13, %v2800_v17  ;;  %v2809_v55 = vsub.f32 %v2631_v47, %v1187_v34  ;;  %v2812_v53 = vsub.f32 %v2625_v42, %v1193_v3  ;;  %v1129_v30 = vpop.f32.mrb[31].mxu1 }
 0x180   : > { %v1195_v6 = vmul.f32 2.0, %v1127_v0  ;;  %v2815_v9 = vsub.f32 %v2628_v45, %v1194_v8  ;;  %v1353_v1 = vmin.f32 %v1352_v16, %v2797_v51  ;;  %v1196_v18 = vmul.f32 2.0, %v1129_v30 }
 0x181   : > { %1345 = vmin.xlane.f32.xlu0 %v1344_v48  ;;  %v1360_v11 = vmin.f32 %v1359_v50, %v2804_v20  ;;  %v1368_v62 = vmin.f32 %v1367_v43, %v2812_v53  ;;  %v2821_v13 = vsub.f32 %v2638_v49, %v1188_v2  ;;  %v3206_v48 = vlaneseq }
 0x182   : > { %1354 = vmin.xlane.f32.xlu1 %v1353_v1  ;;  %v2825_v0 = vsub.f32 %v2631_v47, %v1195_v6  ;;  %v2829_v45 = vsub.f32 %v2638_v49, %v1196_v18 }
 0x183   : > { %v1369_v42 = vmin.f32 %v1368_v62, %v2815_v9  ;;  %v1361_v34 = vmin.f32 %v1360_v11, %v2809_v55  ;;  %v2835_v2 = vand.u32 127, %v3206_v48 }
 0x185   : > { %v1362_v8 = vmin.f32 %v1361_v34, %v2821_v13  ;;  %v1370_v3 = vmin.f32 %v1369_v42, %v2825_v0  ;;  %v2838_v16 = vadd.s32 128, %v2835_v2  ;;  %v2843_v49 = vadd.s32 256, %v2835_v2 }
 0x186   : > { %v2846_v50 = vadd.s32 384, %v2835_v2  ;;  %v2849_v6 = vadd.s32 512, %v2835_v2  ;;  %v2852_v30 = vadd.s32 640, %v2835_v2  ;;  %v2861_v62 = vadd.s32 896, %v2835_v2 }
 0x187   : > { %1363 = vmin.xlane.f32.xlu0 %v1362_v8  ;;  %v1371_v43 = vmin.f32 %v1370_v3, %v2829_v45 }
 0x189   : > { %1372 = vmin.xlane.f32.xlu1 %v1371_v43 }
 0x1fc   : > { %v1310_v47 = vpop.xlane.xlu0 %1309 }
 0x1fd   : > { %vm1383_vm1 = vcmp.eq.f32.partialorder %v2528_v31, %v1310_v47  ;;  %vm1384_vm2 = vcmp.eq.f32.partialorder %v2531_v36, %v1310_v47  ;;  %vm1385_vm3 = vcmp.eq.f32.partialorder %v2562_v54, %v1310_v47  ;;  %v2858_v36 = vadd.s32 768, %v2835_v2 }
 0x1fe   : > { %v1447_v1 = vsel %vm1383_vm1, %v2835_v2, 1024  ;;  %v1448_v31 = vsel %vm1384_vm2, %v2838_v16, 1024  ;;  %vm1386_vm4 = vcmp.eq.f32.partialorder %v2590_v23, %v1310_v47  ;;  %vm1387_vm5 = vcmp.eq.f32.partialorder %v2655_v59, %v1310_v47 }
 0x1ff   : > { %vm1388_vm6 = vcmp.eq.f32.partialorder %v2660_v39, %v1310_v47  ;;  %vm1511_vm7 = vcmp.lt.s32.totalorder %v1447_v1, %v1448_v31  ;;  %vm1389_vm10 = vcmp.eq.f32.partialorder %v2664_v5, %v1310_v47  ;;  %vm1390_vm11 = vcmp.eq.f32.partialorder %v2693_v57, %v1310_v47 }
 0x200   : > { %v1319_v11 = vpop.xlane.xlu0 %1318  ;;  %v1449_v54 = vsel %vm1385_vm3, %v2843_v49, 1024  ;;  %v1512_v18 = vsel %vm1511_vm7, %v1447_v1, %v1448_v31  ;;  %v1450_v42 = vsel %vm1386_vm4, %v2846_v50, 1024  ;;  %v1451_v23 = vsel %vm1387_vm5, %v2849_v6, 1024 }
 0x201   : > { %vm1391_vm8 = vcmp.eq.f32.partialorder %v2534_v37, %v1319_v11  ;;  %vm1392_vm9 = vcmp.eq.f32.partialorder %v2537_v38, %v1319_v11  ;;  %vm1513_vm12 = vcmp.lt.s32.totalorder %v1512_v18, %v1449_v54  ;;  %v1452_v39 = vsel %vm1388_vm6, %v2852_v30, 1024 }
 0x202   : > { %v1455_v59 = vsel %vm1391_vm8, %v2835_v2, 1024  ;;  %v1514_v34 = vsel %vm1513_vm12, %v1512_v18, %v1449_v54  ;;  %vm1393_vm13 = vcmp.eq.f32.partialorder %v2567_v56, %v1319_v11  ;;  %v1456_v37 = vsel %vm1392_vm9, %v2838_v16, 1024 }
 0x203   : > { %v1453_v5 = vsel %vm1389_vm10, %v2858_v36, 1024  ;;  %v1454_v57 = vsel %vm1390_vm11, %v2861_v62, 1024  ;;  %vm1515_vm14 = vcmp.lt.s32.totalorder %v1514_v34, %v1450_v42  ;;  %vm1394_vm15 = vcmp.eq.f32.partialorder %v2615_v33, %v1319_v11 }
 0x204   : > { %v1516_v8 = vsel %vm1515_vm14, %v1514_v34, %v1450_v42  ;;  %vm1395_vm0 = vcmp.eq.f32.partialorder %v2667_v60, %v1319_v11  ;;  %vm1396_vm1 = vcmp.eq.f32.partialorder %v2674_v7, %v1319_v11  ;;  %vm1539_vm2 = vcmp.lt.s32.totalorder %v1455_v59, %v1456_v37 }
 0x205   : > { %v2877_v38 = vpop.xlane.xlu1 %1327  ;;  %vm1517_vm3 = vcmp.lt.s32.totalorder %v1516_v8, %v1451_v23  ;;  %vm1397_vm4 = vcmp.eq.f32.partialorder %v2701_v12, %v1319_v11  ;;  %v1457_v56 = vsel %vm1393_vm13, %v2843_v49, 1024  ;;  %v1540_v3 = vsel %vm1539_vm2, %v1455_v59, %v1456_v37 }
 0x206   : > { %v1518_v43 = vsel %vm1517_vm3, %v1516_v8, %v1451_v23  ;;  %vm1541_vm5 = vcmp.lt.s32.totalorder %v1540_v3, %v1457_v56  ;;  %vm1399_vm6 = vcmp.eq.f32.partialorder %v2540_v40, %v2877_v38  ;;  %vm1400_vm7 = vcmp.eq.f32.partialorder %v2543_v41, %v2877_v38 }
 0x207   : > { %vm1519_vm8 = vcmp.lt.s32.totalorder %v1518_v43, %v1452_v39  ;;  %vm1398_vm9 = vcmp.eq.f32.partialorder %v2708_v22, %v1319_v11  ;;  %v1458_v33 = vsel %vm1394_vm15, %v2846_v50, 1024  ;;  %v1542_v48 = vsel %vm1541_vm5, %v1540_v3, %v1457_v56 }
 0x208   : > { %v1520_v47 = vsel %vm1519_vm8, %v1518_v43, %v1452_v39  ;;  %v1459_v1 = vsel %vm1395_vm0, %v2849_v6, 1024  ;;  %v1460_v31 = vsel %vm1396_vm1, %v2852_v30, 1024  ;;  %vm1543_vm10 = vcmp.lt.s32.totalorder %v1542_v48, %v1458_v33 }
 0x209   : > { %vm1521_vm11 = vcmp.lt.s32.totalorder %v1520_v47, %v1453_v5  ;;  %v1544_v40 = vsel %vm1543_vm10, %v1542_v48, %v1458_v33  ;;  %v1463_v41 = vsel %vm1399_vm6, %v2835_v2, 1024  ;;  %v1464_v54 = vsel %vm1400_vm7, %v2838_v16, 1024  ;;  %v2905_v60 = vpop.xlane.xlu1 %1336 }
 0x20a   : > { %v1522_v18 = vsel %vm1521_vm11, %v1520_v47, %v1453_v5  ;;  %v1461_v42 = vsel %vm1397_vm4, %v2858_v36, 1024  ;;  %vm1545_vm12 = vcmp.lt.s32.totalorder %v1544_v40, %v1459_v1  ;;  %vm1401_vm13 = vcmp.eq.f32.partialorder %v2572_v58, %v2877_v38  ;;  %v3207_v47 = vld [vmem:[#allocation2_spill] sm:$0xff] }
 0x20b   : > { %vm1523_vm14 = vcmp.lt.s32.totalorder %v1522_v18, %v1454_v57  ;;  %v1462_v7 = vsel %vm1398_vm9, %v2861_v62, 1024  ;;  %v1546_v23 = vsel %vm1545_vm12, %v1544_v40, %v1459_v1  ;;  %vm1402_vm15 = vcmp.eq.f32.partialorder %v2599_v25, %v2877_v38  ;;  %v3208_v1 = vld [vmem:[#allocation3_spill] sm:$0xff] }
 0x20c   : > { %v2912_v59 = vsel %vm1523_vm14, %v1522_v18, %v1454_v57  ;;  %vm1547_vm0 = vcmp.lt.s32.totalorder %v1546_v23, %v1460_v31  ;;  %vm1403_vm1 = vcmp.eq.f32.partialorder %v2704_v24, %v2877_v38  ;;  %vm1567_vm2 = vcmp.lt.s32.totalorder %v1463_v41, %v1464_v54  ;;  %v3209_v18 = vld [vmem:[#allocation4_spill] sm:$0xff] }
 0x20d   : > { %v1526_v58 = vshra.s32 %v2912_v59, 16  ;;  %v1548_v12 = vsel %vm1547_vm0, %v1546_v23, %v1460_v31  ;;  %v1465_v39 = vsel %vm1401_vm13, %v2843_v49, 1024  ;;  %v1568_v34 = vsel %vm1567_vm2, %v1463_v41, %v1464_v54 }
 0x20e   : > { %vm1549_vm3 = vcmp.lt.s32.totalorder %v1548_v12, %v1461_v42  ;;  %v1466_v22 = vsel %vm1402_vm15, %v2846_v50, 1024  ;;  %vm1569_vm4 = vcmp.lt.s32.totalorder %v1568_v34, %v1465_v39  ;;  %vm1407_vm5 = vcmp.eq.f32.partialorder %v2547_v44, %v2905_v60  ;;  %v2948_v24 = vpop.xlane.xlu0 %1345 }
 0x20f   : > { %v2921_v25 = vcvt.s32.f32 %v1526_v58  ;;  %v1550_v11 = vsel %vm1549_vm3, %v1548_v12, %v1461_v42  ;;  %v1570_v37 = vsel %vm1569_vm4, %v1568_v34, %v1465_v39  ;;  %vm1408_vm6 = vcmp.eq.f32.partialorder %v2550_v32, %v2905_v60  ;;  %v2984_v58 = vpop.xlane.xlu1 %1354 }
 0x210   : > { %vm1551_vm7 = vcmp.lt.s32.totalorder %v1550_v11, %v1462_v7  ;;  %vm1404_vm8 = vcmp.eq.f32.partialorder %v2711_v10, %v2877_v38  ;;  %vm1405_vm9 = vcmp.eq.f32.partialorder %v2719_v19, %v2877_v38  ;;  %vm1571_vm10 = vcmp.lt.s32.totalorder %v1570_v37, %v1466_v22 }
 0x211   : > { %1529 = vmin.xlane.f32.xlu0 %v2921_v25  ;;  %v2930_v5 = vsel %vm1551_vm7, %v1550_v11, %v1462_v7  ;;  %vm1406_vm11 = vcmp.eq.f32.partialorder %v2748_v46, %v2877_v38  ;;  %v1467_v32 = vsel %vm1403_vm1, %v2849_v6, 1024  ;;  %v1572_v57 = vsel %vm1571_vm10, %v1570_v37, %v1466_v22  ;;  %v3210_v37 = vld [vmem:[#allocation5_spill] sm:$0xff] }
 0x212   : > { %v1554_v8 = vshra.s32 %v2930_v5, 16  ;;  %vm1573_vm12 = vcmp.lt.s32.totalorder %v1572_v57, %v1467_v32  ;;  %v1471_v10 = vsel %vm1407_vm5, %v2835_v2, 1024  ;;  %v1472_v19 = vsel %vm1408_vm6, %v2838_v16, 1024 }
 0x213   : > { %v1468_v56 = vsel %vm1404_vm8, %v2852_v30, 1024  ;;  %v1469_v46 = vsel %vm1405_vm9, %v2858_v36, 1024  ;;  %v1574_v3 = vsel %vm1573_vm12, %v1572_v57, %v1467_v32  ;;  %vm1409_vm13 = vcmp.eq.f32.partialorder %v2578_v14, %v2905_v60 }
 0x214   : > { %v2950_v38 = vcvt.s32.f32 %v1554_v8  ;;  %v1470_v43 = vsel %vm1406_vm11, %v2861_v62, 1024  ;;  %vm1575_vm14 = vcmp.lt.s32.totalorder %v1574_v3, %v1468_v56  ;;  %vm1410_vm15 = vcmp.eq.f32.partialorder %v2602_v26, %v2905_v60 }
 0x215   : > { %v1576_v44 = vsel %vm1575_vm14, %v1574_v3, %v1468_v56  ;;  %vm1411_vm0 = vcmp.eq.f32.partialorder %v2722_v52, %v2905_v60  ;;  %vm1412_vm1 = vcmp.eq.f32.partialorder %v2728_v15, %v2905_v60  ;;  %vm1595_vm2 = vcmp.lt.s32.totalorder %v1471_v10, %v1472_v19  ;;  %v3212_v3 = vld [vmem:[#allocation7_spill] sm:$0xff] }
 0x216   : > { %1557 = vmin.xlane.f32.xlu1 %v2950_v38  ;;  %vm1577_vm3 = vcmp.lt.s32.totalorder %v1576_v44, %v1469_v46  ;;  %vm1413_vm4 = vcmp.eq.f32.partialorder %v2756_v27, %v2905_v60  ;;  %v1473_v14 = vsel %vm1409_vm13, %v2843_v49, 1024  ;;  %v1596_v33 = vsel %vm1595_vm2, %v1471_v10, %v1472_v19 }
 0x217   : > { %v1578_v48 = vsel %vm1577_vm3, %v1576_v44, %v1469_v46  ;;  %vm1597_vm5 = vcmp.lt.s32.totalorder %v1596_v33, %v1473_v14  ;;  %vm1415_vm6 = vcmp.eq.f32.partialorder %v3207_v47, %v2948_v24  ;;  %vm1416_vm7 = vcmp.eq.f32.partialorder %v3208_v1, %v2948_v24  ;;  %v3213_v44 = vld [vmem:[#allocation8_spill] sm:$0xff] }
 0x218   : > { %vm1579_vm8 = vcmp.lt.s32.totalorder %v1578_v48, %v1470_v43  ;;  %vm1414_vm9 = vcmp.eq.f32.partialorder %v2763_v29, %v2905_v60  ;;  %v1474_v31 = vsel %vm1410_vm15, %v2846_v50, 1024  ;;  %v1598_v40 = vsel %vm1597_vm5, %v1596_v33, %v1473_v14  ;;  %v3211_v29 = vld [vmem:[#allocation6_spill] sm:$0xff]  ;;  %v3037_v14 = vpop.xlane.xlu0 %1363 }
 0x219   : > { %v2973_v41 = vsel %vm1579_vm8, %v1578_v48, %v1470_v43  ;;  %v1475_v54 = vsel %vm1411_vm0, %v2849_v6, 1024  ;;  %vm1599_vm10 = vcmp.lt.s32.totalorder %v1598_v40, %v1474_v31  ;;  %vm1417_vm11 = vcmp.eq.f32.partialorder %v3209_v18, %v2948_v24 }
 0x21a   : > { %v1582_v42 = vshra.s32 %v2973_v41, 16  ;;  %v1600_v7 = vsel %vm1599_vm10, %v1598_v40, %v1474_v31  ;;  %v1479_v23 = vsel %vm1415_vm6, %v2835_v2, 1024  ;;  %v1480_v26 = vsel %vm1416_vm7, %v2838_v16, 1024  ;;  %v3214_v40 = vld [vmem:[#allocation17_spill] sm:$0xff] }
 0x21b   : > { %v1476_v12 = vsel %vm1412_vm1, %v2852_v30, 1024  ;;  %v1477_v52 = vsel %vm1413_vm4, %v2858_v36, 1024  ;;  %vm1601_vm12 = vcmp.lt.s32.totalorder %v1600_v7, %v1475_v54  ;;  %v1478_v34 = vsel %vm1414_vm9, %v2861_v62, 1024 }
 0x21c   : > { %v2994_v39 = vcvt.s32.f32 %v1582_v42  ;;  %v1602_v22 = vsel %vm1601_vm12, %v1600_v7, %v1475_v54  ;;  %vm1418_vm13 = vcmp.eq.f32.partialorder %v2621_v35, %v2948_v24  ;;  %vm1419_vm15 = vcmp.eq.f32.partialorder %v2759_v61, %v2948_v24  ;;  %v3216_v54 = vld [vmem:[#allocation10_spill] sm:$0xff] }
 0x21d   : > { %vm1603_vm14 = vcmp.lt.s32.totalorder %v1602_v22, %v1476_v12  ;;  %v1481_v15 = vsel %vm1417_vm11, %v2843_v49, 1024  ;;  %vm1623_vm0 = vcmp.lt.s32.totalorder %v1479_v23, %v1480_v26  ;;  %vm1423_vm1 = vcmp.eq.f32.partialorder %v3210_v37, %v2984_v58  ;;  %v3217_v42 = vld [vmem:[#allocation18_spill] sm:$0xff] }
 0x21e   : > { %1585 = vmin.xlane.f32.xlu0 %v2994_v39  ;;  %v1604_v27 = vsel %vm1603_vm14, %v1602_v22, %v1476_v12  ;;  %v1624_v11 = vsel %vm1623_vm0, %v1479_v23, %v1480_v26  ;;  %vm1424_vm2 = vcmp.eq.f32.partialorder %v3211_v29, %v2984_v58  ;;  %vm1420_vm4 = vcmp.eq.f32.partialorder %v2766_v28, %v2948_v24  ;;  %v3219_v29 = vld [vmem:[#allocation14_spill] sm:$0xff] }
 0x21f   : > { %vm1605_vm3 = vcmp.lt.s32.totalorder %v1604_v27, %v1477_v52  ;;  %vm1421_vm5 = vcmp.eq.f32.partialorder %v2774_v63, %v2948_v24  ;;  %vm1625_vm6 = vcmp.lt.s32.totalorder %v1624_v11, %v1481_v15  ;;  %vm1422_vm7 = vcmp.eq.f32.partialorder %v2788_v4, %v2948_v24  ;;  %v3215_v24 = vld [vmem:[#allocation9_spill] sm:$0xff] }
 0x220   : > { %v1606_v60 = vsel %vm1605_vm3, %v1604_v27, %v1477_v52  ;;  %v1482_v32 = vsel %vm1418_vm13, %v2846_v50, 1024  ;;  %v1626_v57 = vsel %vm1625_vm6, %v1624_v11, %v1481_v15  ;;  %v1487_v8 = vsel %vm1423_vm1, %v2835_v2, 1024  ;;  %v3218_v15 = vld [vmem:[#allocation12_spill] sm:$0xff]  ;;  %v3073_v27 = vpop.xlane.xlu1 %1372 }
 0x221   : > { %vm1607_vm8 = vcmp.lt.s32.totalorder %v1606_v60, %v1478_v34  ;;  %vm1627_vm9 = vcmp.lt.s32.totalorder %v1626_v57, %v1482_v32  ;;  %v1488_v10 = vsel %vm1424_vm2, %v2838_v16, 1024  ;;  %v1483_v56 = vsel %vm1419_vm15, %v2849_v6, 1024 }
 0x222   : > { %v3022_v19 = vsel %vm1607_vm8, %v1606_v60, %v1478_v34  ;;  %v1628_v46 = vsel %vm1627_vm9, %v1626_v57, %v1482_v32  ;;  %vm1425_vm10 = vcmp.eq.f32.partialorder %v3212_v3, %v2984_v58  ;;  %v1484_v43 = vsel %vm1420_vm4, %v2852_v30, 1024 }
 0x223   : > { %v1610_v35 = vshra.s32 %v3022_v19, 16  ;;  %vm1629_vm11 = vcmp.lt.s32.totalorder %v1628_v46, %v1483_v56  ;;  %vm1426_vm12 = vcmp.eq.f32.partialorder %v3213_v44, %v2984_v58  ;;  %v1485_v61 = vsel %vm1421_vm5, %v2858_v36, 1024 }
 0x224   : > { %v1486_v33 = vsel %vm1422_vm7, %v2861_v62, 1024  ;;  %v1630_v48 = vsel %vm1629_vm11, %v1628_v46, %v1483_v56  ;;  %vm1651_vm13 = vcmp.lt.s32.totalorder %v1487_v8, %v1488_v10  ;;  %v1489_v47 = vsel %vm1425_vm10, %v2843_v49, 1024 }
 0x225   : > { %v3047_v28 = vcvt.s32.f32 %v1610_v35  ;;  %vm1631_vm14 = vcmp.lt.s32.totalorder %v1630_v48, %v1484_v43  ;;  %v1652_v1 = vsel %vm1651_vm13, %v1487_v8, %v1488_v10  ;;  %vm1427_vm15 = vcmp.eq.f32.partialorder %v3214_v40, %v2984_v58  ;;  %v3220_v8 = vld [vmem:[#allocation11_spill] sm:$0xff]  ;;  %v3221_v10 = vld [vmem:[#allocation13_spill] sm:$0xff] }
 0x226   : > { %v1632_v31 = vsel %vm1631_vm14, %v1630_v48, %v1484_v43  ;;  %v1490_v63 = vsel %vm1426_vm12, %v2846_v50, 1024  ;;  %vm1653_vm0 = vcmp.lt.s32.totalorder %v1652_v1, %v1489_v47  ;;  %vm1431_vm2 = vcmp.eq.f32.partialorder %v3215_v24, %v3037_v14 }
 0x227   : > { %1613 = vmin.xlane.f32.xlu1 %v3047_v28  ;;  %vm1633_vm1 = vcmp.lt.s32.totalorder %v1632_v31, %v1485_v61  ;;  %v1654_v4 = vsel %vm1653_vm0, %v1652_v1, %v1489_v47  ;;  %vm1432_vm3 = vcmp.eq.f32.partialorder %v3216_v54, %v3037_v14  ;;  %vm1428_vm4 = vcmp.eq.f32.partialorder %v3217_v42, %v2984_v58 }
 0x228   : > { %v1634_v18 = vsel %vm1633_vm1, %v1632_v31, %v1485_v61  ;;  %vm1429_vm5 = vcmp.eq.f32.partialorder %v2794_v21, %v2984_v58  ;;  %vm1655_vm6 = vcmp.lt.s32.totalorder %v1654_v4, %v1490_v63  ;;  %vm1430_vm8 = vcmp.eq.f32.partialorder %v2797_v51, %v2984_v58 }
 0x229   : > { %vm1635_vm7 = vcmp.lt.s32.totalorder %v1634_v18, %v1486_v33  ;;  %v1491_v7 = vsel %vm1427_vm15, %v2849_v6, 1024  ;;  %v1656_v23 = vsel %vm1655_vm6, %v1654_v4, %v1490_v63  ;;  %v1495_v12 = vsel %vm1431_vm2, %v2835_v2, 1024 }
 0x22a   : > { %v3065_v26 = vsel %vm1635_vm7, %v1634_v18, %v1486_v33  ;;  %vm1657_vm9 = vcmp.lt.s32.totalorder %v1656_v23, %v1491_v7  ;;  %v1496_v52 = vsel %vm1432_vm3, %v2838_v16, 1024  ;;  %v1492_v22 = vsel %vm1428_vm4, %v2852_v30, 1024  ;;  %v3222_v33 = vld [vmem:[#allocation15_spill] sm:$0xff] }
 0x22b   : > { %v1638_v34 = vshra.s32 %v3065_v26, 16  ;;  %v1658_v21 = vsel %vm1657_vm9, %v1656_v23, %v1491_v7  ;;  %vm1433_vm10 = vcmp.eq.f32.partialorder %v3218_v15, %v3037_v14  ;;  %v1493_v51 = vsel %vm1429_vm5, %v2858_v36, 1024 }
 0x22c   : > { %v1494_v58 = vsel %vm1430_vm8, %v2861_v62, 1024  ;;  %vm1659_vm11 = vcmp.lt.s32.totalorder %v1658_v21, %v1492_v22  ;;  %vm1434_vm12 = vcmp.eq.f32.partialorder %v3219_v29, %v3037_v14  ;;  %vm1679_vm13 = vcmp.lt.s32.totalorder %v1495_v12, %v1496_v52 }
 0x22d   : > { %v3077_v11 = vcvt.s32.f32 %v1638_v34  ;;  %v1660_v37 = vsel %vm1659_vm11, %v1658_v21, %v1492_v22  ;;  %vm1435_vm15 = vcmp.eq.f32.partialorder %v2800_v17, %v3037_v14  ;;  %v1497_v60 = vsel %vm1433_vm10, %v2843_v49, 1024 }
 0x22e   : > { %vm1661_vm14 = vcmp.lt.s32.totalorder %v1660_v37, %v1493_v51  ;;  %v1680_v32 = vsel %vm1679_vm13, %v1495_v12, %v1496_v52  ;;  %vm1439_vm1 = vcmp.eq.f32.partialorder %v3220_v8, %v3073_v27  ;;  %vm1440_vm2 = vcmp.eq.f32.partialorder %v3221_v10, %v3073_v27 }
 0x22f   : > { %1641 = vmin.xlane.f32.xlu0 %v3077_v11  ;;  %v1662_v57 = vsel %vm1661_vm14, %v1660_v37, %v1493_v51  ;;  %vm1681_vm0 = vcmp.lt.s32.totalorder %v1680_v32, %v1497_v60  ;;  %v1498_v56 = vsel %vm1434_vm12, %v2846_v50, 1024  ;;  %vm1436_vm4 = vcmp.eq.f32.partialorder %v2804_v20, %v3037_v14 }
 0x230   : > { %vm1663_vm3 = vcmp.lt.s32.totalorder %v1662_v57, %v1494_v58  ;;  %v1682_v46 = vsel %vm1681_vm0, %v1680_v32, %v1497_v60  ;;  %v1499_v17 = vsel %vm1435_vm15, %v2849_v6, 1024  ;;  %v1503_v44 = vsel %vm1439_vm1, %v2835_v2, 1024  ;;  %v3223_v2 = vld [vmem:[#allocation16_spill] sm:$0xff] }
 0x231   : > { %v3090_v3 = vsel %vm1663_vm3, %v1662_v57, %v1494_v58  ;;  %vm1683_vm5 = vcmp.lt.s32.totalorder %v1682_v46, %v1498_v56  ;;  %v1504_v61 = vsel %vm1440_vm2, %v2838_v16, 1024  ;;  %vm1437_vm6 = vcmp.eq.f32.partialorder %v2809_v55, %v3037_v14 }
 0x232   : > { %v1666_v35 = vshra.s32 %v3090_v3, 16  ;;  %v1684_v43 = vsel %vm1683_vm5, %v1682_v46, %v1498_v56  ;;  %vm1441_vm8 = vcmp.eq.f32.partialorder %v3222_v33, %v3073_v27  ;;  %v1500_v20 = vsel %vm1436_vm4, %v2852_v30, 1024 }
 0x233   : > { %vm1685_vm7 = vcmp.lt.s32.totalorder %v1684_v43, %v1499_v17  ;;  %vm1438_vm9 = vcmp.eq.f32.partialorder %v2821_v13, %v3037_v14  ;;  %vm1442_vm11 = vcmp.eq.f32.partialorder %v3223_v2, %v3073_v27  ;;  %vm1707_vm12 = vcmp.lt.s32.totalorder %v1503_v44, %v1504_v61 }
 0x234   : > { %v3102_v48 = vcvt.s32.f32 %v1666_v35  ;;  %v1686_v47 = vsel %vm1685_vm7, %v1684_v43, %v1499_v17  ;;  %v1501_v55 = vsel %vm1437_vm6, %v2858_v36, 1024  ;;  %v1505_v1 = vsel %vm1441_vm8, %v2843_v49, 1024 }
 0x235   : > { %vm1687_vm10 = vcmp.lt.s32.totalorder %v1686_v47, %v1500_v20  ;;  %v1708_v31 = vsel %vm1707_vm12, %v1503_v44, %v1504_v61  ;;  %vm1443_vm14 = vcmp.eq.f32.partialorder %v2812_v53, %v3073_v27  ;;  %v1502_v13 = vsel %vm1438_vm9, %v2861_v62, 1024 }
 0x236   : > { %1669 = vmin.xlane.f32.xlu1 %v3102_v48  ;;  %v1688_v16 = vsel %vm1687_vm10, %v1686_v47, %v1500_v20  ;;  %vm1709_vm15 = vcmp.lt.s32.totalorder %v1708_v31, %v1505_v1  ;;  %v1506_v40 = vsel %vm1442_vm11, %v2846_v50, 1024  ;;  %vm1444_vm1 = vcmp.eq.f32.partialorder %v2815_v9, %v3073_v27 }
 0x237   : > { %vm1689_vm13 = vcmp.lt.s32.totalorder %v1688_v16, %v1501_v55  ;;  %v1710_v63 = vsel %vm1709_vm15, %v1708_v31, %v1505_v1  ;;  %v1507_v49 = vsel %vm1443_vm14, %v2849_v6, 1024  ;;  %vm1445_vm3 = vcmp.eq.f32.partialorder %v2825_v0, %v3073_v27 }
 0x238   : > { %v1690_v14 = vsel %vm1689_vm13, %v1688_v16, %v1501_v55  ;;  %vm1711_vm2 = vcmp.lt.s32.totalorder %v1710_v63, %v1506_v40  ;;  %v1508_v53 = vsel %vm1444_vm1, %v2852_v30, 1024  ;;  %vm1446_vm5 = vcmp.eq.f32.partialorder %v2829_v45, %v3073_v27 }
 0x239   : > { %vm1691_vm0 = vcmp.lt.s32.totalorder %v1690_v14, %v1502_v13  ;;  %v1712_v24 = vsel %vm1711_vm2, %v1710_v63, %v1506_v40  ;;  %v1509_v9 = vsel %vm1445_vm3, %v2858_v36, 1024  ;;  %v1510_v6 = vsel %vm1446_vm5, %v2861_v62, 1024 }
 0x23a   : > { %v1692_v4 = vsel %vm1691_vm0, %v1690_v14, %v1502_v13  ;;  %vm1713_vm4 = vcmp.lt.s32.totalorder %v1712_v24, %v1507_v49  ;;  %v1525_v30 = vand.u32 65535, %v2912_v59  ;;  %v1553_v45 = vand.u32 65535, %v2930_v5 }
 0x23b   : > { %v1694_v54 = vshra.s32 %v1692_v4, 16  ;;  %v1714_v18 = vsel %vm1713_vm4, %v1712_v24, %v1507_v49  ;;  %v1581_v15 = vand.u32 65535, %v2973_v41  ;;  %v1693_v8 = vand.u32 65535, %v1692_v4 }
 0x23c   : > { %vm1715_vm6 = vcmp.lt.s32.totalorder %v1714_v18, %v1508_v53  ;;  %v1527_v34 = vcvt.s32.f32 %v1525_v30  ;;  %v1555_v21 = vcvt.s32.f32 %v1553_v45  ;;  %vm1735_vm1 = vcmask 7168  }
 0x23d   : > { %v1696_v42 = vcvt.s32.f32 %v1694_v54  ;;  %v1716_v50 = vsel %vm1715_vm6, %v1714_v18, %v1508_v53  ;;  %v1583_v51 = vcvt.s32.f32 %v1581_v15  ;;  %v1695_v10 = vcvt.s32.f32 %v1693_v8 }
 0x23e   : > { %vm1717_vm7 = vcmp.lt.s32.totalorder %v1716_v50, %v1509_v9 }
 0x23f   : > { %1697 = vmin.xlane.f32.xlu0 %v1696_v42  ;;  %v1718_v7 = vsel %vm1717_vm7, %v1716_v50, %v1509_v9 }
 0x240   : > { %vm1719_vm8 = vcmp.lt.s32.totalorder %v1718_v7, %v1510_v6 }
 0x241   : > { %v1720_v23 = vsel %vm1719_vm8, %v1718_v7, %v1510_v6 }
 0x242   : > { %v1722_v0 = vshra.s32 %v1720_v23, 16  ;;  %v1721_v56 = vand.u32 65535, %v1720_v23 }
 0x244   : > { %v1724_v12 = vcvt.s32.f32 %v1722_v0 }
 0x246   : > { %1725 = vmin.xlane.f32.xlu1 %v1724_v12 }
 0x29e   : > { %v1530_v52 = vpop.xlane.xlu0 %1529 }
 0x29f   : > { %vm1531_vm9 = vcmp.eq.f32.partialorder %v2921_v25, %v1530_v52  ;;  %v1609_v25 = vand.u32 65535, %v3022_v19 }
 0x2a0   : > { %v1532_v36 = vsel %vm1531_vm9, %v1527_v34, inf }
 0x2a1   : > { %1533 = vmin.xlane.f32.xlu0 %v1532_v36  ;;  %v1611_v5 = vcvt.s32.f32 %v1609_v25 }
 0x2a3   : > { %v1558_v22 = vpop.xlane.xlu1 %1557 }
 0x2a4   : > { %vm1559_vm10 = vcmp.eq.f32.partialorder %v2950_v38, %v1558_v22  ;;  %v1637_v38 = vand.u32 65535, %v3065_v26  ;;  %v1564_v61 = vcvt.f32.s32 %v1558_v22 }
 0x2a5   : > { %v1560_v62 = vsel %vm1559_vm10, %v1555_v21, inf }
 0x2a6   : > { %1561 = vmin.xlane.f32.xlu1 %v1560_v62  ;;  %v1639_v60 = vcvt.s32.f32 %v1637_v38  ;;  %v1565_v20 = vshll.u32 %v1564_v61, 16 }
 0x2ab   : > { %v1586_v27 = vpop.xlane.xlu0 %1585 }
 0x2ac   : > { %vm1587_vm11 = vcmp.eq.f32.partialorder %v2994_v39, %v1586_v27  ;;  %v1665_v39 = vand.u32 65535, %v3090_v3  ;;  %v1536_v3 = vcvt.f32.s32 %v1530_v52  ;;  %v1592_v55 = vcvt.f32.s32 %v1586_v27 }
 0x2ad   : > { %v1588_v59 = vsel %vm1587_vm11, %v1583_v51, inf }
 0x2ae   : > { %1589 = vmin.xlane.f32.xlu0 %v1588_v59  ;;  %v1667_v57 = vcvt.s32.f32 %v1665_v39  ;;  %v1537_v43 = vshll.u32 %v1536_v3, 16  ;;  %v1593_v1 = vshll.u32 %v1592_v55, 16 }
 0x2b4   : > { %v1614_v58 = vpop.xlane.xlu1 %1613 }
 0x2b5   : > { %vm1615_vm12 = vcmp.eq.f32.partialorder %v3047_v28, %v1614_v58  ;;  %v1620_v14 = vcvt.f32.s32 %v1614_v58 }
 0x2b6   : > { %v1616_v37 = vsel %vm1615_vm12, %v1611_v5, inf }
 0x2b7   : > { %1617 = vmin.xlane.f32.xlu1 %v1616_v37  ;;  %v1621_v63 = vshll.u32 %v1620_v14, 16 }
 0x2bc   : > { %v1642_v29 = vpop.xlane.xlu0 %1641 }
 0x2bd   : > { %vm1643_vm13 = vcmp.eq.f32.partialorder %v3077_v11, %v1642_v29  ;;  %v1723_v11 = vcvt.s32.f32 %v1721_v56  ;;  %v1648_v24 = vcvt.f32.s32 %v1642_v29 }
 0x2be   : > { %v1644_v41 = vsel %vm1643_vm13, %v1639_v60, inf }
 0x2bf   : > { %1645 = vmin.xlane.f32.xlu0 %v1644_v41  ;;  %v1649_v53 = vshll.u32 %v1648_v24, 16 }
 0x2c3   : > { %v1670_v32 = vpop.xlane.xlu1 %1669 }
 0x2c4   : > { %vm1671_vm14 = vcmp.eq.f32.partialorder %v3102_v48, %v1670_v32  ;;  %v1676_v9 = vcvt.f32.s32 %v1670_v32 }
 0x2c5   : > { %v1672_v19 = vsel %vm1671_vm14, %v1667_v57, inf }
 0x2c6   : > { %1673 = vmin.xlane.f32.xlu1 %v1672_v19  ;;  %v1677_v6 = vshll.u32 %v1676_v9, 16 }
 0x2cc   : > { %v1698_v28 = vpop.xlane.xlu0 %1697 }
 0x2cd   : > { %vm1699_vm15 = vcmp.eq.f32.partialorder %v1696_v42, %v1698_v28  ;;  %v1704_v0 = vcvt.f32.s32 %v1698_v28 }
 0x2ce   : > { %v1700_v26 = vsel %vm1699_vm15, %v1695_v10, inf }
 0x2cf   : > { %1701 = vmin.xlane.f32.xlu0 %v1700_v26  ;;  %v1705_v30 = vshll.u32 %v1704_v0, 16 }
 0x2d3   : > { %v1726_v46 = vpop.xlane.xlu1 %1725 }
 0x2d4   : > { %vm1727_vm0 = vcmp.eq.f32.partialorder %v1724_v12, %v1726_v46  ;;  %v1732_v45 = vcvt.f32.s32 %v1726_v46 }
 0x2d5   : > { %v1728_v17 = vsel %vm1727_vm0, %v1723_v11, inf }
 0x2d6   : > { %1729 = vmin.xlane.f32.xlu1 %v1728_v17  ;;  %v1733_v22 = vshll.u32 %v1732_v45, 16 }
 0x32e   : > { %v1534_v35 = vpop.xlane.xlu0 %1533 }
 0x32f   : > { %v1535_v44 = vcvt.f32.s32 %v1534_v35 }
 0x331   : > { %v1538_v33 = vadd.s32 %v1537_v43, %v1535_v44 }
 0x333   : > { %1736 = vst.msk [vmem:[%s3143_s4] sm:$0xff] %vm1735_vm1, %v1538_v33  ;;  %v1562_v48 = vpop.xlane.xlu1 %1561 }
 0x334   : > { %v1563_v47 = vcvt.f32.s32 %v1562_v48 }
 0x336   : > { %v1566_v2 = vadd.s32 %v1565_v20, %v1563_v47 }
 0x338   : > { %1737 = vst.msk [vmem:[%s3143_s4 + $0x8] sm:$0xff] %vm1735_vm1, %v1566_v2 }
 0x33b   : > { %v1590_v16 = vpop.xlane.xlu0 %1589 }
 0x33c   : > { %v1591_v31 = vcvt.f32.s32 %v1590_v16 }
 0x33e   : > { %v1594_v13 = vadd.s32 %v1593_v1, %v1591_v31 }
 0x340   : > { %1738 = vst.msk [vmem:[%s3143_s4 + $0x10] sm:$0xff] %vm1735_vm1, %v1594_v13 }
 0x344   : > { %v1618_v40 = vpop.xlane.xlu1 %1617 }
 0x345   : > { %v1619_v4 = vcvt.f32.s32 %v1618_v40 }
 0x347   : > { %v1622_v49 = vadd.s32 %v1621_v63, %v1619_v4 }
 0x349   : > { %1739 = vst.msk [vmem:[%s3143_s4 + $0x18] sm:$0xff] %vm1735_vm1, %v1622_v49 }
 0x34c   : > { %v1646_v54 = vpop.xlane.xlu0 %1645 }
 0x34d   : > { %v1647_v18 = vcvt.f32.s32 %v1646_v54 }
 0x34f   : > { %v1650_v42 = vadd.s32 %v1649_v53, %v1647_v18 }
 0x351   : > { %1740 = vst.msk [vmem:[%s3143_s4 + $0x20] sm:$0xff] %vm1735_vm1, %v1650_v42 }
 0x353   : > { %v1674_v50 = vpop.xlane.xlu1 %1673 }
 0x354   : > { %v1675_v7 = vcvt.f32.s32 %v1674_v50 }
 0x356   : > { %v1678_v23 = vadd.s32 %v1677_v6, %v1675_v7 }
 0x358   : > { %1741 = vst.msk [vmem:[%s3143_s4 + $0x28] sm:$0xff] %vm1735_vm1, %v1678_v23 }
 0x35c   : > { %v1702_v12 = vpop.xlane.xlu0 %1701 }
 0x35d   : > { %v1703_v52 = vcvt.f32.s32 %v1702_v12 }
 0x35f   : > { %v1706_v34 = vadd.s32 %v1705_v30, %v1703_v52 }
 0x361   : > { %1742 = vst.msk [vmem:[%s3143_s4 + $0x30] sm:$0xff] %vm1735_vm1, %v1706_v34 }
 0x363   : > { %v1730_v36 = vpop.xlane.xlu1 %1729 }
 0x364   : > { %v1731_v21 = vcvt.f32.s32 %v1730_v36 }
 0x366   : > { %v1734_v62 = vadd.s32 %v1733_v22, %v1731_v21 }
 0x368   : > { %1743 = vst.msk [vmem:[%s3143_s4 + $0x38] sm:$0xff] %vm1735_vm1, %v1734_v62 }
 0x369 PF: > { %s13_s12 = sadd.s32 1, %s2097_s12  }
 0x36a   : > { %p10_p4 = scmp.ge.s32.totalorder %s13_s12, 4  }
 0x36c   :  { %12 = sbr.rel (!%p10_p4) target bundleno = 1 (0x1), region = 62 }

</bundles_post_ra>
